<compile_context>
chip_gen: v5e
topology: v5e:2x2
jax: 0.10.0
libtpu: 0.0.40
codegen_flags: <defaults>
</compile_context>

<pallas_src>
import functools

import jax
import jax.numpy as jnp
from jax.experimental import pallas as pl
from jax.experimental.pallas import tpu as pltpu


def _attention_lstm_kernel(gx_ref, whh_ref, attw_ref, attb_ref,
                           cvtw_ref, cvtb_ref, outw_ref, outb_ref,
                           out_ref, hout_ref):
    L, Nb, G = gx_ref.shape
    H = G // 4

    # Load the (small) weights once before the recurrence.
    whh = whh_ref[...]                       # (H, 4H)
    attw = attw_ref[...]                     # (H, H)
    attb = attb_ref[...]                     # (1, H)
    cvtw_h = cvtw_ref[0:H, :]                # (H, H)   cat(h, .) half
    cvtw_hat = cvtw_ref[H:2 * H, :]          # (H, H)   cat(., h_hat) half
    cvtb = cvtb_ref[...]                     # (1, H)

    zeros = jnp.zeros((Nb, H), jnp.float32)
    h, c, h_tilde = zeros, zeros, zeros
    hs = [zeros]                             # history of h_tilde; row 0 = initial zeros

    # L is small & static: a Python loop gives fully static indices (gx_ref[i],
    # hs[0..i]) and keeps all recurrent state in vregs — no scratch VMEM traffic.
    for i in range(L):
        # ---- LSTMCell(x_i, (h_tilde, c)); x-projection hoisted to the wrapper ----
        gates = gx_ref[i] + jnp.dot(h_tilde, whh,
                                    preferred_element_type=jnp.float32)   # (Nb, 4H)
        i_g = jax.nn.sigmoid(gates[:, 0:H])
        f_g = jax.nn.sigmoid(gates[:, H:2 * H])
        g_g = jnp.tanh(gates[:, 2 * H:3 * H])
        o_g = jax.nn.sigmoid(gates[:, 3 * H:4 * H])
        c = f_g * c + i_g * g_g
        h = o_g * jnp.tanh(c)

        # ---- attention over the exact (static-length) history hs[0..i] -----------
        q = jnp.dot(h, attw, preferred_element_type=jnp.float32) + attb   # (Nb, H)
        scores = [jnp.sum(ht * q, axis=-1, keepdims=True) for ht in hs]   # (Nb, 1) each
        m = scores[0]
        for s in scores[1:]:
            m = jnp.maximum(m, s)
        exps = [jnp.exp(s - m) for s in scores]                           # EUP
        denom = exps[0]
        for e in exps[1:]:
            denom = denom + e
        inv = pl.reciprocal(denom, approx=False)                          # EUP divide
        h_hat = (exps[0] * inv) * hs[0]
        for e, ht in zip(exps[1:], hs[1:]):
            h_hat = h_hat + (e * inv) * ht                                # (Nb, H)

        # ---- h_tilde = cvt_linear(cat(h, h_hat)): split weight, no activation concat
        h_tilde = (jnp.dot(h, cvtw_h, preferred_element_type=jnp.float32)
                   + jnp.dot(h_hat, cvtw_hat, preferred_element_type=jnp.float32)
                   + cvtb)                                                # (Nb, H)
        hs.append(h_tilde)

    # final head: (H -> 1) as a VPU/XLU lane reduce instead of a 1-column MXU dot
    logits = jnp.sum(h * outw_ref[...], axis=-1, keepdims=True) + outb_ref[...]
    out_ref[...] = jax.nn.sigmoid(logits)
    hout_ref[...] = h


def attention_model_forward(X, params, block_n=None):
    """X: (N, L, input_size) float32  ->  (output (N, 1), h (N, H))."""
    N, L, Din = X.shape
    H = params["att_w"].shape[0]
    Nb = N if block_n is None else min(block_n, N)
    assert N % Nb == 0, "batch must be divisible by the batch block size"

    # ---- hoisted input projection: one big matmul (M = N*L) outside the kernel ----
    wih = params["w_ih"].T                                    # (Din, 4H)
    b = (params["b_ih"] + params["b_hh"]).reshape(1, 1, 4 * H)
    gates_x = jnp.einsum("nld,dk->lnk", X, wih) + b           # (L, N, 4H) time-major

    # remaining weights, pre-transposed so the kernel computes x @ W
    whh = params["w_hh"].T                                    # (H, 4H)
    attw = params["att_w"].T                                  # (H, H)
    attb = params["att_b"].reshape(1, H)
    cvtw = params["cvt_w"].T                                  # (2H, H)
    cvtb = params["cvt_b"].reshape(1, H)
    outw = params["out_w"].reshape(1, H)                      # kept (1, H) for VPU head
    outb = params["out_b"].reshape(1, 1)

    grid = (N // Nb,)
    out, h = pl.pallas_call(
        _attention_lstm_kernel,
        out_shape=(jax.ShapeDtypeStruct((N, 1), jnp.float32),
                   jax.ShapeDtypeStruct((N, H), jnp.float32)),
        grid_spec=pltpu.PrefetchScalarGridSpec(
            num_scalar_prefetch=0,
            grid=grid,
            in_specs=[
                pl.BlockSpec((L, Nb, 4 * H), lambda bi: (0, bi, 0)),   # gates_x
                pl.BlockSpec((H, 4 * H), lambda bi: (0, 0)),           # W_hh
                pl.BlockSpec((H, H), lambda bi: (0, 0)),               # att_w
                pl.BlockSpec((1, H), lambda bi: (0, 0)),               # att_b
                pl.BlockSpec((2 * H, H), lambda bi: (0, 0)),           # cvt_w
                pl.BlockSpec((1, H), lambda bi: (0, 0)),               # cvt_b
                pl.BlockSpec((1, H), lambda bi: (0, 0)),               # out_w
                pl.BlockSpec((1, 1), lambda bi: (0, 0)),               # out_b
            ],
            out_specs=(pl.BlockSpec((Nb, 1), lambda bi: (bi, 0)),
                       pl.BlockSpec((Nb, H), lambda bi: (bi, 0)))),
        compiler_params=pltpu.CompilerParams(
            dimension_semantics=("parallel",)),
    )(gates_x, whh, attw, attb, cvtw, cvtb, outw, outb)
    return out, h


def reference_forward(X, params):
    """Pure-JAX reference mirroring the PyTorch forward exactly."""
    N, L, Din = X.shape
    H = params["att_w"].shape[0]
    h = jnp.zeros((N, H), jnp.float32)
    c = jnp.zeros((N, H), jnp.float32)
    h_tilde = jnp.zeros((N, H), jnp.float32)
    hs = [jnp.zeros((N, H), jnp.float32)]
    for i in range(L):
        gates = (X[:, i, :] @ params["w_ih"].T + params["b_ih"]
                 + h_tilde @ params["w_hh"].T + params["b_hh"])
        i_g = jax.nn.sigmoid(gates[:, :H])
        f_g = jax.nn.sigmoid(gates[:, H:2 * H])
        g_g = jnp.tanh(gates[:, 2 * H:3 * H])
        o_g = jax.nn.sigmoid(gates[:, 3 * H:])
        c = f_g * c + i_g * g_g
        h = o_g * jnp.tanh(c)
        q = h @ params["att_w"].T + params["att_b"]                     # (N, H)
        hs_arr = jnp.stack(hs, axis=1)                                  # (N, t, H)
        scores = jnp.einsum("nth,nh->nt", hs_arr, q)
        aw = jax.nn.softmax(scores, axis=1)
        h_hat = jnp.einsum("nth,nt->nh", hs_arr, aw)
        h_tilde = (jnp.concatenate([h, h_hat], axis=1) @ params["cvt_w"].T
                   + params["cvt_b"])
        hs.append(h_tilde)
    out = jax.nn.sigmoid(h @ params["out_w"].T + params["out_b"])
    return out, h


def init_params(key, input_size, hidden_size):
    ks = jax.random.split(key, 10)
    s = 0.1
    H = hidden_size
    return {
        "w_ih": s * jax.random.normal(ks[0], (4 * H, input_size), jnp.float32),
        "w_hh": s * jax.random.normal(ks[1], (4 * H, H), jnp.float32),
        "b_ih": s * jax.random.normal(ks[2], (4 * H,), jnp.float32),
        "b_hh": s * jax.random.normal(ks[3], (4 * H,), jnp.float32),
        "att_w": s * jax.random.normal(ks[4], (H, H), jnp.float32),
        "att_b": s * jax.random.normal(ks[5], (H,), jnp.float32),
        "cvt_w": s * jax.random.normal(ks[6], (H, 2 * H), jnp.float32),
        "cvt_b": s * jax.random.normal(ks[7], (H,), jnp.float32),
        "out_w": s * jax.random.normal(ks[8], (1, H), jnp.float32),
        "out_b": s * jax.random.normal(ks[9], (1,), jnp.float32),
    }


if __name__ == "__main__":
    # TODO(synk): tokenizer / pretrained ELECTRA encoder (embed_texts) is not part
    # of forward(X) and is not implemented.
    N, L, INPUT_SIZE, HIDDEN_SIZE = 4, 8, 16, 32

    key = jax.random.PRNGKey(0)
    k_x, k_p = jax.random.split(key)
    X = jax.random.normal(k_x, (N, L, INPUT_SIZE), jnp.float32)
    params = init_params(k_p, INPUT_SIZE, HIDDEN_SIZE)

    out, h = jax.block_until_ready(
        jax.jit(functools.partial(attention_model_forward, params=params))(X))

    out_ref, h_ref = reference_forward(X, params)
    assert out.shape == (N, 1) and h.shape == (N, HIDDEN_SIZE)
    assert jnp.allclose(out, out_ref, atol=1e-5, rtol=1e-5), "output mismatch"
    assert jnp.allclose(h, h_ref, atol=1e-5, rtol=1e-5), "hidden mismatch"

    print("KERNEL_OK")
</pallas_src>

<mosaic_0001>
module attributes {stable_mosaic.version = 11 : i64} {
  func.func @_attention_lstm_kernel(%arg0: i32, %arg1: memref<8x4x128xf32, #tpu.memory_space<vmem>>, %arg2: memref<32x128xf32, #tpu.memory_space<vmem>>, %arg3: memref<32x32xf32, #tpu.memory_space<vmem>>, %arg4: memref<1x32xf32, #tpu.memory_space<vmem>>, %arg5: memref<64x32xf32, #tpu.memory_space<vmem>>, %arg6: memref<1x32xf32, #tpu.memory_space<vmem>>, %arg7: memref<1x32xf32, #tpu.memory_space<vmem>>, %arg8: memref<1x1xf32, #tpu.memory_space<vmem>>, %arg9: memref<4x1xf32, #tpu.memory_space<vmem>>, %arg10: memref<4x32xf32, #tpu.memory_space<vmem>>) attributes {dimension_semantics = [#tpu.dimension_semantics<parallel>], iteration_bounds = array<i64: 1>, scalar_prefetch = 0 : i64, scratch_operands = 0 : i64, tpu.core_type = #tpu.core_type<tc>, window_params = [{transform_indices = @transform_0, window_bounds = array<i64: 8, 4, 128>}, {pipeline_mode = #tpu.pipeline_mode<synchronous>, transform_indices = @transform_1, window_bounds = array<i64: 32, 128>}, {pipeline_mode = #tpu.pipeline_mode<synchronous>, transform_indices = @transform_2, window_bounds = array<i64: 32, 32>}, {pipeline_mode = #tpu.pipeline_mode<synchronous>, transform_indices = @transform_3, window_bounds = array<i64: 1, 32>}, {pipeline_mode = #tpu.pipeline_mode<synchronous>, transform_indices = @transform_4, window_bounds = array<i64: 64, 32>}, {pipeline_mode = #tpu.pipeline_mode<synchronous>, transform_indices = @transform_5, window_bounds = array<i64: 1, 32>}, {pipeline_mode = #tpu.pipeline_mode<synchronous>, transform_indices = @transform_6, window_bounds = array<i64: 1, 32>}, {pipeline_mode = #tpu.pipeline_mode<synchronous>, transform_indices = @transform_7, window_bounds = array<i64: 1, 1>}, {transform_indices = @transform_8, window_bounds = array<i64: 4, 1>}, {transform_indices = @transform_9, window_bounds = array<i64: 4, 32>}]} {
    %c0 = arith.constant 0 : index
    %c0_0 = arith.constant 0 : index
    %0 = vector.load %arg2[%c0, %c0_0] : memref<32x128xf32, #tpu.memory_space<vmem>>, vector<32x128xf32>
    %c0_1 = arith.constant 0 : index
    %c0_2 = arith.constant 0 : index
    %1 = vector.load %arg3[%c0_1, %c0_2] : memref<32x32xf32, #tpu.memory_space<vmem>>, vector<32x32xf32>
    %c0_3 = arith.constant 0 : index
    %c0_4 = arith.constant 0 : index
    %2 = vector.load %arg4[%c0_3, %c0_4] : memref<1x32xf32, #tpu.memory_space<vmem>>, vector<1x32xf32>
    %c0_5 = arith.constant 0 : index
    %c0_6 = arith.constant 0 : index
    %3 = vector.load %arg5[%c0_5, %c0_6] : memref<64x32xf32, #tpu.memory_space<vmem>>, vector<32x32xf32>
    %c32 = arith.constant 32 : index
    %c0_7 = arith.constant 0 : index
    %4 = vector.load %arg5[%c32, %c0_7] : memref<64x32xf32, #tpu.memory_space<vmem>>, vector<32x32xf32>
    %c0_8 = arith.constant 0 : index
    %c0_9 = arith.constant 0 : index
    %5 = vector.load %arg6[%c0_8, %c0_9] : memref<1x32xf32, #tpu.memory_space<vmem>>, vector<1x32xf32>
    %cst = arith.constant 0.000000e+00 : f32
    %6 = vector.broadcast %cst : f32 to vector<4x32xf32>
    %c0_10 = arith.constant 0 : index
    %c0_11 = arith.constant 0 : index
    %c0_12 = arith.constant 0 : index
    %7 = vector.load %arg1[%c0_10, %c0_11, %c0_12] : memref<8x4x128xf32, #tpu.memory_space<vmem>>, vector<1x4x128xf32>
    %8 = vector.shape_cast %7 : vector<1x4x128xf32> to vector<4x128xf32>
    %cst_13 = arith.constant dense<0.000000e+00> : vector<4x128xf32>
    %9 = tpu.matmul %6, %0, %cst_13 {dimension_numbers = #tpu.dot_dimension_numbers<[1], [0], [0], [1], [0, 0, 1, 1], [], []>} : vector<4x32xf32>, vector<32x128xf32>, vector<4x128xf32> -> vector<4x128xf32>
    %10 = arith.addf %8, %9 : vector<4x128xf32>
    %11 = vector.extract_strided_slice %10 {offsets = [0, 0], sizes = [4, 32], strides = [1, 1]} : vector<4x128xf32> to vector<4x32xf32>
    %12 = arith.negf %11 : vector<4x32xf32>
    %13 = math.exp %12 : vector<4x32xf32>
    %cst_14 = arith.constant 1.000000e+00 : f32
    %14 = vector.broadcast %cst_14 : f32 to vector<4x32xf32>
    %15 = arith.addf %14, %13 : vector<4x32xf32>
    %16 = arith.divf %14, %15 : vector<4x32xf32>
    %17 = vector.extract_strided_slice %10 {offsets = [0, 32], sizes = [4, 32], strides = [1, 1]} : vector<4x128xf32> to vector<4x32xf32>
    %18 = arith.negf %17 : vector<4x32xf32>
    %19 = math.exp %18 : vector<4x32xf32>
    %cst_15 = arith.constant 1.000000e+00 : f32
    %20 = vector.broadcast %cst_15 : f32 to vector<4x32xf32>
    %21 = arith.addf %20, %19 : vector<4x32xf32>
    %22 = arith.divf %20, %21 : vector<4x32xf32>
    %23 = vector.extract_strided_slice %10 {offsets = [0, 64], sizes = [4, 32], strides = [1, 1]} : vector<4x128xf32> to vector<4x32xf32>
    %24 = math.tanh %23 : vector<4x32xf32>
    %25 = vector.extract_strided_slice %10 {offsets = [0, 96], sizes = [4, 32], strides = [1, 1]} : vector<4x128xf32> to vector<4x32xf32>
    %26 = arith.negf %25 : vector<4x32xf32>
    %27 = math.exp %26 : vector<4x32xf32>
    %cst_16 = arith.constant 1.000000e+00 : f32
    %28 = vector.broadcast %cst_16 : f32 to vector<4x32xf32>
    %29 = arith.addf %28, %27 : vector<4x32xf32>
    %30 = arith.divf %28, %29 : vector<4x32xf32>
    %31 = arith.mulf %22, %6 : vector<4x32xf32>
    %32 = arith.mulf %16, %24 : vector<4x32xf32>
    %33 = arith.addf %31, %32 : vector<4x32xf32>
    %34 = math.tanh %33 : vector<4x32xf32>
    %35 = arith.mulf %30, %34 : vector<4x32xf32>
    %cst_17 = arith.constant dense<0.000000e+00> : vector<4x32xf32>
    %36 = tpu.matmul %35, %1, %cst_17 {dimension_numbers = #tpu.dot_dimension_numbers<[1], [0], [0], [1], [0, 0, 1, 1], [], []>} : vector<4x32xf32>, vector<32x32xf32>, vector<4x32xf32> -> vector<4x32xf32>
    %37 = vector.broadcast %2 : vector<1x32xf32> to vector<4x32xf32>
    %38 = arith.addf %36, %37 : vector<4x32xf32>
    %39 = arith.mulf %6, %38 : vector<4x32xf32>
    %cst_18 = arith.constant dense<0.000000e+00> : vector<4xf32>
    %40 = vector.multi_reduction <add>, %39, %cst_18 [1] : vector<4x32xf32> to vector<4xf32>
    %41 = vector.shape_cast %40 : vector<4xf32> to vector<4x1xf32>
    %42 = arith.subf %41, %41 : vector<4x1xf32>
    %43 = math.exp %42 : vector<4x1xf32>
    %44 = tpu.reciprocal %43 : vector<4x1xf32> -> vector<4x1xf32>
    %45 = arith.mulf %43, %44 : vector<4x1xf32>
    %46 = vector.broadcast %45 : vector<4x1xf32> to vector<4x32xf32>
    %47 = arith.mulf %46, %6 : vector<4x32xf32>
    %cst_19 = arith.constant dense<0.000000e+00> : vector<4x32xf32>
    %48 = tpu.matmul %35, %3, %cst_19 {dimension_numbers = #tpu.dot_dimension_numbers<[1], [0], [0], [1], [0, 0, 1, 1], [], []>} : vector<4x32xf32>, vector<32x32xf32>, vector<4x32xf32> -> vector<4x32xf32>
    %cst_20 = arith.constant dense<0.000000e+00> : vector<4x32xf32>
    %49 = tpu.matmul %47, %4, %cst_20 {dimension_numbers = #tpu.dot_dimension_numbers<[1], [0], [0], [1], [0, 0, 1, 1], [], []>} : vector<4x32xf32>, vector<32x32xf32>, vector<4x32xf32> -> vector<4x32xf32>
    %50 = arith.addf %48, %49 : vector<4x32xf32>
    %51 = vector.broadcast %5 : vector<1x32xf32> to vector<4x32xf32>
    %52 = arith.addf %50, %51 : vector<4x32xf32>
    %c1 = arith.constant 1 : index
    %c0_21 = arith.constant 0 : index
    %c0_22 = arith.constant 0 : index
    %53 = vector.load %arg1[%c1, %c0_21, %c0_22] : memref<8x4x128xf32, #tpu.memory_space<vmem>>, vector<1x4x128xf32>
    %54 = vector.shape_cast %53 : vector<1x4x128xf32> to vector<4x128xf32>
    %cst_23 = arith.constant dense<0.000000e+00> : vector<4x128xf32>
    %55 = tpu.matmul %52, %0, %cst_23 {dimension_numbers = #tpu.dot_dimension_numbers<[1], [0], [0], [1], [0, 0, 1, 1], [], []>} : vector<4x32xf32>, vector<32x128xf32>, vector<4x128xf32> -> vector<4x128xf32>
    %56 = arith.addf %54, %55 : vector<4x128xf32>
    %57 = vector.extract_strided_slice %56 {offsets = [0, 0], sizes = [4, 32], strides = [1, 1]} : vector<4x128xf32> to vector<4x32xf32>
    %58 = arith.negf %57 : vector<4x32xf32>
    %59 = math.exp %58 : vector<4x32xf32>
    %cst_24 = arith.constant 1.000000e+00 : f32
    %60 = vector.broadcast %cst_24 : f32 to vector<4x32xf32>
    %61 = arith.addf %60, %59 : vector<4x32xf32>
    %62 = arith.divf %60, %61 : vector<4x32xf32>
    %63 = vector.extract_strided_slice %56 {offsets = [0, 32], sizes = [4, 32], strides = [1, 1]} : vector<4x128xf32> to vector<4x32xf32>
    %64 = arith.negf %63 : vector<4x32xf32>
    %65 = math.exp %64 : vector<4x32xf32>
    %cst_25 = arith.constant 1.000000e+00 : f32
    %66 = vector.broadcast %cst_25 : f32 to vector<4x32xf32>
    %67 = arith.addf %66, %65 : vector<4x32xf32>
    %68 = arith.divf %66, %67 : vector<4x32xf32>
    %69 = vector.extract_strided_slice %56 {offsets = [0, 64], sizes = [4, 32], strides = [1, 1]} : vector<4x128xf32> to vector<4x32xf32>
    %70 = math.tanh %69 : vector<4x32xf32>
    %71 = vector.extract_strided_slice %56 {offsets = [0, 96], sizes = [4, 32], strides = [1, 1]} : vector<4x128xf32> to vector<4x32xf32>
    %72 = arith.negf %71 : vector<4x32xf32>
    %73 = math.exp %72 : vector<4x32xf32>
    %cst_26 = arith.constant 1.000000e+00 : f32
    %74 = vector.broadcast %cst_26 : f32 to vector<4x32xf32>
    %75 = arith.addf %74, %73 : vector<4x32xf32>
    %76 = arith.divf %74, %75 : vector<4x32xf32>
    %77 = arith.mulf %68, %33 : vector<4x32xf32>
    %78 = arith.mulf %62, %70 : vector<4x32xf32>
    %79 = arith.addf %77, %78 : vector<4x32xf32>
    %80 = math.tanh %79 : vector<4x32xf32>
    %81 = arith.mulf %76, %80 : vector<4x32xf32>
    %cst_27 = arith.constant dense<0.000000e+00> : vector<4x32xf32>
    %82 = tpu.matmul %81, %1, %cst_27 {dimension_numbers = #tpu.dot_dimension_numbers<[1], [0], [0], [1], [0, 0, 1, 1], [], []>} : vector<4x32xf32>, vector<32x32xf32>, vector<4x32xf32> -> vector<4x32xf32>
    %83 = vector.broadcast %2 : vector<1x32xf32> to vector<4x32xf32>
    %84 = arith.addf %82, %83 : vector<4x32xf32>
    %85 = arith.mulf %6, %84 : vector<4x32xf32>
    %cst_28 = arith.constant dense<0.000000e+00> : vector<4xf32>
    %86 = vector.multi_reduction <add>, %85, %cst_28 [1] : vector<4x32xf32> to vector<4xf32>
    %87 = vector.shape_cast %86 : vector<4xf32> to vector<4x1xf32>
    %88 = arith.mulf %52, %84 : vector<4x32xf32>
    %cst_29 = arith.constant dense<0.000000e+00> : vector<4xf32>
    %89 = vector.multi_reduction <add>, %88, %cst_29 [1] : vector<4x32xf32> to vector<4xf32>
    %90 = vector.shape_cast %89 : vector<4xf32> to vector<4x1xf32>
    %91 = arith.maximumf %87, %90 : vector<4x1xf32>
    %92 = arith.subf %87, %91 : vector<4x1xf32>
    %93 = math.exp %92 : vector<4x1xf32>
    %94 = arith.subf %90, %91 : vector<4x1xf32>
    %95 = math.exp %94 : vector<4x1xf32>
    %96 = arith.addf %93, %95 : vector<4x1xf32>
    %97 = tpu.reciprocal %96 : vector<4x1xf32> -> vector<4x1xf32>
    %98 = arith.mulf %93, %97 : vector<4x1xf32>
    %99 = vector.broadcast %98 : vector<4x1xf32> to vector<4x32xf32>
    %100 = arith.mulf %99, %6 : vector<4x32xf32>
    %101 = arith.mulf %95, %97 : vector<4x1xf32>
    %102 = vector.broadcast %101 : vector<4x1xf32> to vector<4x32xf32>
    %103 = arith.mulf %102, %52 : vector<4x32xf32>
    %104 = arith.addf %100, %103 : vector<4x32xf32>
    %cst_30 = arith.constant dense<0.000000e+00> : vector<4x32xf32>
    %105 = tpu.matmul %81, %3, %cst_30 {dimension_numbers = #tpu.dot_dimension_numbers<[1], [0], [0], [1], [0, 0, 1, 1], [], []>} : vector<4x32xf32>, vector<32x32xf32>, vector<4x32xf32> -> vector<4x32xf32>
    %cst_31 = arith.constant dense<0.000000e+00> : vector<4x32xf32>
    %106 = tpu.matmul %104, %4, %cst_31 {dimension_numbers = #tpu.dot_dimension_numbers<[1], [0], [0], [1], [0, 0, 1, 1], [], []>} : vector<4x32xf32>, vector<32x32xf32>, vector<4x32xf32> -> vector<4x32xf32>
    %107 = arith.addf %105, %106 : vector<4x32xf32>
    %108 = vector.broadcast %5 : vector<1x32xf32> to vector<4x32xf32>
    %109 = arith.addf %107, %108 : vector<4x32xf32>
    %c2 = arith.constant 2 : index
    %c0_32 = arith.constant 0 : index
    %c0_33 = arith.constant 0 : index
    %110 = vector.load %arg1[%c2, %c0_32, %c0_33] : memref<8x4x128xf32, #tpu.memory_space<vmem>>, vector<1x4x128xf32>
    %111 = vector.shape_cast %110 : vector<1x4x128xf32> to vector<4x128xf32>
    %cst_34 = arith.constant dense<0.000000e+00> : vector<4x128xf32>
    %112 = tpu.matmul %109, %0, %cst_34 {dimension_numbers = #tpu.dot_dimension_numbers<[1], [0], [0], [1], [0, 0, 1, 1], [], []>} : vector<4x32xf32>, vector<32x128xf32>, vector<4x128xf32> -> vector<4x128xf32>
    %113 = arith.addf %111, %112 : vector<4x128xf32>
    %114 = vector.extract_strided_slice %113 {offsets = [0, 0], sizes = [4, 32], strides = [1, 1]} : vector<4x128xf32> to vector<4x32xf32>
    %115 = arith.negf %114 : vector<4x32xf32>
    %116 = math.exp %115 : vector<4x32xf32>
    %cst_35 = arith.constant 1.000000e+00 : f32
    %117 = vector.broadcast %cst_35 : f32 to vector<4x32xf32>
    %118 = arith.addf %117, %116 : vector<4x32xf32>
    %119 = arith.divf %117, %118 : vector<4x32xf32>
    %120 = vector.extract_strided_slice %113 {offsets = [0, 32], sizes = [4, 32], strides = [1, 1]} : vector<4x128xf32> to vector<4x32xf32>
    %121 = arith.negf %120 : vector<4x32xf32>
    %122 = math.exp %121 : vector<4x32xf32>
    %cst_36 = arith.constant 1.000000e+00 : f32
    %123 = vector.broadcast %cst_36 : f32 to vector<4x32xf32>
    %124 = arith.addf %123, %122 : vector<4x32xf32>
    %125 = arith.divf %123, %124 : vector<4x32xf32>
    %126 = vector.extract_strided_slice %113 {offsets = [0, 64], sizes = [4, 32], strides = [1, 1]} : vector<4x128xf32> to vector<4x32xf32>
    %127 = math.tanh %126 : vector<4x32xf32>
    %128 = vector.extract_strided_slice %113 {offsets = [0, 96], sizes = [4, 32], strides = [1, 1]} : vector<4x128xf32> to vector<4x32xf32>
    %129 = arith.negf %128 : vector<4x32xf32>
    %130 = math.exp %129 : vector<4x32xf32>
    %cst_37 = arith.constant 1.000000e+00 : f32
    %131 = vector.broadcast %cst_37 : f32 to vector<4x32xf32>
    %132 = arith.addf %131, %130 : vector<4x32xf32>
    %133 = arith.divf %131, %132 : vector<4x32xf32>
    %134 = arith.mulf %125, %79 : vector<4x32xf32>
    %135 = arith.mulf %119, %127 : vector<4x32xf32>
    %136 = arith.addf %134, %135 : vector<4x32xf32>
    %137 = math.tanh %136 : vector<4x32xf32>
    %138 = arith.mulf %133, %137 : vector<4x32xf32>
    %cst_38 = arith.constant dense<0.000000e+00> : vector<4x32xf32>
    %139 = tpu.matmul %138, %1, %cst_38 {dimension_numbers = #tpu.dot_dimension_numbers<[1], [0], [0], [1], [0, 0, 1, 1], [], []>} : vector<4x32xf32>, vector<32x32xf32>, vector<4x32xf32> -> vector<4x32xf32>
    %140 = vector.broadcast %2 : vector<1x32xf32> to vector<4x32xf32>
    %141 = arith.addf %139, %140 : vector<4x32xf32>
    %142 = arith.mulf %6, %141 : vector<4x32xf32>
    %cst_39 = arith.constant dense<0.000000e+00> : vector<4xf32>
    %143 = vector.multi_reduction <add>, %142, %cst_39 [1] : vector<4x32xf32> to vector<4xf32>
    %144 = vector.shape_cast %143 : vector<4xf32> to vector<4x1xf32>
    %145 = arith.mulf %52, %141 : vector<4x32xf32>
    %cst_40 = arith.constant dense<0.000000e+00> : vector<4xf32>
    %146 = vector.multi_reduction <add>, %145, %cst_40 [1] : vector<4x32xf32> to vector<4xf32>
    %147 = vector.shape_cast %146 : vector<4xf32> to vector<4x1xf32>
    %148 = arith.mulf %109, %141 : vector<4x32xf32>
    %cst_41 = arith.constant dense<0.000000e+00> : vector<4xf32>
    %149 = vector.multi_reduction <add>, %148, %cst_41 [1] : vector<4x32xf32> to vector<4xf32>
    %150 = vector.shape_cast %149 : vector<4xf32> to vector<4x1xf32>
    %151 = arith.maximumf %144, %147 : vector<4x1xf32>
    %152 = arith.maximumf %151, %150 : vector<4x1xf32>
    %153 = arith.subf %144, %152 : vector<4x1xf32>
    %154 = math.exp %153 : vector<4x1xf32>
    %155 = arith.subf %147, %152 : vector<4x1xf32>
    %156 = math.exp %155 : vector<4x1xf32>
    %157 = arith.subf %150, %152 : vector<4x1xf32>
    %158 = math.exp %157 : vector<4x1xf32>
    %159 = arith.addf %154, %156 : vector<4x1xf32>
    %160 = arith.addf %159, %158 : vector<4x1xf32>
    %161 = tpu.reciprocal %160 : vector<4x1xf32> -> vector<4x1xf32>
    %162 = arith.mulf %154, %161 : vector<4x1xf32>
    %163 = vector.broadcast %162 : vector<4x1xf32> to vector<4x32xf32>
    %164 = arith.mulf %163, %6 : vector<4x32xf32>
    %165 = arith.mulf %156, %161 : vector<4x1xf32>
    %166 = vector.broadcast %165 : vector<4x1xf32> to vector<4x32xf32>
    %167 = arith.mulf %166, %52 : vector<4x32xf32>
    %168 = arith.addf %164, %167 : vector<4x32xf32>
    %169 = arith.mulf %158, %161 : vector<4x1xf32>
    %170 = vector.broadcast %169 : vector<4x1xf32> to vector<4x32xf32>
    %171 = arith.mulf %170, %109 : vector<4x32xf32>
    %172 = arith.addf %168, %171 : vector<4x32xf32>
    %cst_42 = arith.constant dense<0.000000e+00> : vector<4x32xf32>
    %173 = tpu.matmul %138, %3, %cst_42 {dimension_numbers = #tpu.dot_dimension_numbers<[1], [0], [0], [1], [0, 0, 1, 1], [], []>} : vector<4x32xf32>, vector<32x32xf32>, vector<4x32xf32> -> vector<4x32xf32>
    %cst_43 = arith.constant dense<0.000000e+00> : vector<4x32xf32>
    %174 = tpu.matmul %172, %4, %cst_43 {dimension_numbers = #tpu.dot_dimension_numbers<[1], [0], [0], [1], [0, 0, 1, 1], [], []>} : vector<4x32xf32>, vector<32x32xf32>, vector<4x32xf32> -> vector<4x32xf32>
    %175 = arith.addf %173, %174 : vector<4x32xf32>
    %176 = vector.broadcast %5 : vector<1x32xf32> to vector<4x32xf32>
    %177 = arith.addf %175, %176 : vector<4x32xf32>
    %c3 = arith.constant 3 : index
    %c0_44 = arith.constant 0 : index
    %c0_45 = arith.constant 0 : index
    %178 = vector.load %arg1[%c3, %c0_44, %c0_45] : memref<8x4x128xf32, #tpu.memory_space<vmem>>, vector<1x4x128xf32>
    %179 = vector.shape_cast %178 : vector<1x4x128xf32> to vector<4x128xf32>
    %cst_46 = arith.constant dense<0.000000e+00> : vector<4x128xf32>
    %180 = tpu.matmul %177, %0, %cst_46 {dimension_numbers = #tpu.dot_dimension_numbers<[1], [0], [0], [1], [0, 0, 1, 1], [], []>} : vector<4x32xf32>, vector<32x128xf32>, vector<4x128xf32> -> vector<4x128xf32>
    %181 = arith.addf %179, %180 : vector<4x128xf32>
    %182 = vector.extract_strided_slice %181 {offsets = [0, 0], sizes = [4, 32], strides = [1, 1]} : vector<4x128xf32> to vector<4x32xf32>
    %183 = arith.negf %182 : vector<4x32xf32>
    %184 = math.exp %183 : vector<4x32xf32>
    %cst_47 = arith.constant 1.000000e+00 : f32
    %185 = vector.broadcast %cst_47 : f32 to vector<4x32xf32>
    %186 = arith.addf %185, %184 : vector<4x32xf32>
    %187 = arith.divf %185, %186 : vector<4x32xf32>
    %188 = vector.extract_strided_slice %181 {offsets = [0, 32], sizes = [4, 32], strides = [1, 1]} : vector<4x128xf32> to vector<4x32xf32>
    %189 = arith.negf %188 : vector<4x32xf32>
    %190 = math.exp %189 : vector<4x32xf32>
    %cst_48 = arith.constant 1.000000e+00 : f32
    %191 = vector.broadcast %cst_48 : f32 to vector<4x32xf32>
    %192 = arith.addf %191, %190 : vector<4x32xf32>
    %193 = arith.divf %191, %192 : vector<4x32xf32>
    %194 = vector.extract_strided_slice %181 {offsets = [0, 64], sizes = [4, 32], strides = [1, 1]} : vector<4x128xf32> to vector<4x32xf32>
    %195 = math.tanh %194 : vector<4x32xf32>
    %196 = vector.extract_strided_slice %181 {offsets = [0, 96], sizes = [4, 32], strides = [1, 1]} : vector<4x128xf32> to vector<4x32xf32>
    %197 = arith.negf %196 : vector<4x32xf32>
    %198 = math.exp %197 : vector<4x32xf32>
    %cst_49 = arith.constant 1.000000e+00 : f32
    %199 = vector.broadcast %cst_49 : f32 to vector<4x32xf32>
    %200 = arith.addf %199, %198 : vector<4x32xf32>
    %201 = arith.divf %199, %200 : vector<4x32xf32>
    %202 = arith.mulf %193, %136 : vector<4x32xf32>
    %203 = arith.mulf %187, %195 : vector<4x32xf32>
    %204 = arith.addf %202, %203 : vector<4x32xf32>
    %205 = math.tanh %204 : vector<4x32xf32>
    %206 = arith.mulf %201, %205 : vector<4x32xf32>
    %cst_50 = arith.constant dense<0.000000e+00> : vector<4x32xf32>
    %207 = tpu.matmul %206, %1, %cst_50 {dimension_numbers = #tpu.dot_dimension_numbers<[1], [0], [0], [1], [0, 0, 1, 1], [], []>} : vector<4x32xf32>, vector<32x32xf32>, vector<4x32xf32> -> vector<4x32xf32>
    %208 = vector.broadcast %2 : vector<1x32xf32> to vector<4x32xf32>
    %209 = arith.addf %207, %208 : vector<4x32xf32>
    %210 = arith.mulf %6, %209 : vector<4x32xf32>
    %cst_51 = arith.constant dense<0.000000e+00> : vector<4xf32>
    %211 = vector.multi_reduction <add>, %210, %cst_51 [1] : vector<4x32xf32> to vector<4xf32>
    %212 = vector.shape_cast %211 : vector<4xf32> to vector<4x1xf32>
    %213 = arith.mulf %52, %209 : vector<4x32xf32>
    %cst_52 = arith.constant dense<0.000000e+00> : vector<4xf32>
    %214 = vector.multi_reduction <add>, %213, %cst_52 [1] : vector<4x32xf32> to vector<4xf32>
    %215 = vector.shape_cast %214 : vector<4xf32> to vector<4x1xf32>
    %216 = arith.mulf %109, %209 : vector<4x32xf32>
    %cst_53 = arith.constant dense<0.000000e+00> : vector<4xf32>
    %217 = vector.multi_reduction <add>, %216, %cst_53 [1] : vector<4x32xf32> to vector<4xf32>
    %218 = vector.shape_cast %217 : vector<4xf32> to vector<4x1xf32>
    %219 = arith.mulf %177, %209 : vector<4x32xf32>
    %cst_54 = arith.constant dense<0.000000e+00> : vector<4xf32>
    %220 = vector.multi_reduction <add>, %219, %cst_54 [1] : vector<4x32xf32> to vector<4xf32>
    %221 = vector.shape_cast %220 : vector<4xf32> to vector<4x1xf32>
    %222 = arith.maximumf %212, %215 : vector<4x1xf32>
    %223 = arith.maximumf %222, %218 : vector<4x1xf32>
    %224 = arith.maximumf %223, %221 : vector<4x1xf32>
    %225 = arith.subf %212, %224 : vector<4x1xf32>
    %226 = math.exp %225 : vector<4x1xf32>
    %227 = arith.subf %215, %224 : vector<4x1xf32>
    %228 = math.exp %227 : vector<4x1xf32>
    %229 = arith.subf %218, %224 : vector<4x1xf32>
    %230 = math.exp %229 : vector<4x1xf32>
    %231 = arith.subf %221, %224 : vector<4x1xf32>
    %232 = math.exp %231 : vector<4x1xf32>
    %233 = arith.addf %226, %228 : vector<4x1xf32>
    %234 = arith.addf %233, %230 : vector<4x1xf32>
    %235 = arith.addf %234, %232 : vector<4x1xf32>
    %236 = tpu.reciprocal %235 : vector<4x1xf32> -> vector<4x1xf32>
    %237 = arith.mulf %226, %236 : vector<4x1xf32>
    %238 = vector.broadcast %237 : vector<4x1xf32> to vector<4x32xf32>
    %239 = arith.mulf %238, %6 : vector<4x32xf32>
    %240 = arith.mulf %228, %236 : vector<4x1xf32>
    %241 = vector.broadcast %240 : vector<4x1xf32> to vector<4x32xf32>
    %242 = arith.mulf %241, %52 : vector<4x32xf32>
    %243 = arith.addf %239, %242 : vector<4x32xf32>
    %244 = arith.mulf %230, %236 : vector<4x1xf32>
    %245 = vector.broadcast %244 : vector<4x1xf32> to vector<4x32xf32>
    %246 = arith.mulf %245, %109 : vector<4x32xf32>
    %247 = arith.addf %243, %246 : vector<4x32xf32>
    %248 = arith.mulf %232, %236 : vector<4x1xf32>
    %249 = vector.broadcast %248 : vector<4x1xf32> to vector<4x32xf32>
    %250 = arith.mulf %249, %177 : vector<4x32xf32>
    %251 = arith.addf %247, %250 : vector<4x32xf32>
    %cst_55 = arith.constant dense<0.000000e+00> : vector<4x32xf32>
    %252 = tpu.matmul %206, %3, %cst_55 {dimension_numbers = #tpu.dot_dimension_numbers<[1], [0], [0], [1], [0, 0, 1, 1], [], []>} : vector<4x32xf32>, vector<32x32xf32>, vector<4x32xf32> -> vector<4x32xf32>
    %cst_56 = arith.constant dense<0.000000e+00> : vector<4x32xf32>
    %253 = tpu.matmul %251, %4, %cst_56 {dimension_numbers = #tpu.dot_dimension_numbers<[1], [0], [0], [1], [0, 0, 1, 1], [], []>} : vector<4x32xf32>, vector<32x32xf32>, vector<4x32xf32> -> vector<4x32xf32>
    %254 = arith.addf %252, %253 : vector<4x32xf32>
    %255 = vector.broadcast %5 : vector<1x32xf32> to vector<4x32xf32>
    %256 = arith.addf %254, %255 : vector<4x32xf32>
    %c4 = arith.constant 4 : index
    %c0_57 = arith.constant 0 : index
    %c0_58 = arith.constant 0 : index
    %257 = vector.load %arg1[%c4, %c0_57, %c0_58] : memref<8x4x128xf32, #tpu.memory_space<vmem>>, vector<1x4x128xf32>
    %258 = vector.shape_cast %257 : vector<1x4x128xf32> to vector<4x128xf32>
    %cst_59 = arith.constant dense<0.000000e+00> : vector<4x128xf32>
    %259 = tpu.matmul %256, %0, %cst_59 {dimension_numbers = #tpu.dot_dimension_numbers<[1], [0], [0], [1], [0, 0, 1, 1], [], []>} : vector<4x32xf32>, vector<32x128xf32>, vector<4x128xf32> -> vector<4x128xf32>
    %260 = arith.addf %258, %259 : vector<4x128xf32>
    %261 = vector.extract_strided_slice %260 {offsets = [0, 0], sizes = [4, 32], strides = [1, 1]} : vector<4x128xf32> to vector<4x32xf32>
    %262 = arith.negf %261 : vector<4x32xf32>
    %263 = math.exp %262 : vector<4x32xf32>
    %cst_60 = arith.constant 1.000000e+00 : f32
    %264 = vector.broadcast %cst_60 : f32 to vector<4x32xf32>
    %265 = arith.addf %264, %263 : vector<4x32xf32>
    %266 = arith.divf %264, %265 : vector<4x32xf32>
    %267 = vector.extract_strided_slice %260 {offsets = [0, 32], sizes = [4, 32], strides = [1, 1]} : vector<4x128xf32> to vector<4x32xf32>
    %268 = arith.negf %267 : vector<4x32xf32>
    %269 = math.exp %268 : vector<4x32xf32>
    %cst_61 = arith.constant 1.000000e+00 : f32
    %270 = vector.broadcast %cst_61 : f32 to vector<4x32xf32>
    %271 = arith.addf %270, %269 : vector<4x32xf32>
    %272 = arith.divf %270, %271 : vector<4x32xf32>
    %273 = vector.extract_strided_slice %260 {offsets = [0, 64], sizes = [4, 32], strides = [1, 1]} : vector<4x128xf32> to vector<4x32xf32>
    %274 = math.tanh %273 : vector<4x32xf32>
    %275 = vector.extract_strided_slice %260 {offsets = [0, 96], sizes = [4, 32], strides = [1, 1]} : vector<4x128xf32> to vector<4x32xf32>
    %276 = arith.negf %275 : vector<4x32xf32>
    %277 = math.exp %276 : vector<4x32xf32>
    %cst_62 = arith.constant 1.000000e+00 : f32
    %278 = vector.broadcast %cst_62 : f32 to vector<4x32xf32>
    %279 = arith.addf %278, %277 : vector<4x32xf32>
    %280 = arith.divf %278, %279 : vector<4x32xf32>
    %281 = arith.mulf %272, %204 : vector<4x32xf32>
    %282 = arith.mulf %266, %274 : vector<4x32xf32>
    %283 = arith.addf %281, %282 : vector<4x32xf32>
    %284 = math.tanh %283 : vector<4x32xf32>
    %285 = arith.mulf %280, %284 : vector<4x32xf32>
    %cst_63 = arith.constant dense<0.000000e+00> : vector<4x32xf32>
    %286 = tpu.matmul %285, %1, %cst_63 {dimension_numbers = #tpu.dot_dimension_numbers<[1], [0], [0], [1], [0, 0, 1, 1], [], []>} : vector<4x32xf32>, vector<32x32xf32>, vector<4x32xf32> -> vector<4x32xf32>
    %287 = vector.broadcast %2 : vector<1x32xf32> to vector<4x32xf32>
    %288 = arith.addf %286, %287 : vector<4x32xf32>
    %289 = arith.mulf %6, %288 : vector<4x32xf32>
    %cst_64 = arith.constant dense<0.000000e+00> : vector<4xf32>
    %290 = vector.multi_reduction <add>, %289, %cst_64 [1] : vector<4x32xf32> to vector<4xf32>
    %291 = vector.shape_cast %290 : vector<4xf32> to vector<4x1xf32>
    %292 = arith.mulf %52, %288 : vector<4x32xf32>
    %cst_65 = arith.constant dense<0.000000e+00> : vector<4xf32>
    %293 = vector.multi_reduction <add>, %292, %cst_65 [1] : vector<4x32xf32> to vector<4xf32>
    %294 = vector.shape_cast %293 : vector<4xf32> to vector<4x1xf32>
    %295 = arith.mulf %109, %288 : vector<4x32xf32>
    %cst_66 = arith.constant dense<0.000000e+00> : vector<4xf32>
    %296 = vector.multi_reduction <add>, %295, %cst_66 [1] : vector<4x32xf32> to vector<4xf32>
    %297 = vector.shape_cast %296 : vector<4xf32> to vector<4x1xf32>
    %298 = arith.mulf %177, %288 : vector<4x32xf32>
    %cst_67 = arith.constant dense<0.000000e+00> : vector<4xf32>
    %299 = vector.multi_reduction <add>, %298, %cst_67 [1] : vector<4x32xf32> to vector<4xf32>
    %300 = vector.shape_cast %299 : vector<4xf32> to vector<4x1xf32>
    %301 = arith.mulf %256, %288 : vector<4x32xf32>
    %cst_68 = arith.constant dense<0.000000e+00> : vector<4xf32>
    %302 = vector.multi_reduction <add>, %301, %cst_68 [1] : vector<4x32xf32> to vector<4xf32>
    %303 = vector.shape_cast %302 : vector<4xf32> to vector<4x1xf32>
    %304 = arith.maximumf %291, %294 : vector<4x1xf32>
    %305 = arith.maximumf %304, %297 : vector<4x1xf32>
    %306 = arith.maximumf %305, %300 : vector<4x1xf32>
    %307 = arith.maximumf %306, %303 : vector<4x1xf32>
    %308 = arith.subf %291, %307 : vector<4x1xf32>
    %309 = math.exp %308 : vector<4x1xf32>
    %310 = arith.subf %294, %307 : vector<4x1xf32>
    %311 = math.exp %310 : vector<4x1xf32>
    %312 = arith.subf %297, %307 : vector<4x1xf32>
    %313 = math.exp %312 : vector<4x1xf32>
    %314 = arith.subf %300, %307 : vector<4x1xf32>
    %315 = math.exp %314 : vector<4x1xf32>
    %316 = arith.subf %303, %307 : vector<4x1xf32>
    %317 = math.exp %316 : vector<4x1xf32>
    %318 = arith.addf %309, %311 : vector<4x1xf32>
    %319 = arith.addf %318, %313 : vector<4x1xf32>
    %320 = arith.addf %319, %315 : vector<4x1xf32>
    %321 = arith.addf %320, %317 : vector<4x1xf32>
    %322 = tpu.reciprocal %321 : vector<4x1xf32> -> vector<4x1xf32>
    %323 = arith.mulf %309, %322 : vector<4x1xf32>
    %324 = vector.broadcast %323 : vector<4x1xf32> to vector<4x32xf32>
    %325 = arith.mulf %324, %6 : vector<4x32xf32>
    %326 = arith.mulf %311, %322 : vector<4x1xf32>
    %327 = vector.broadcast %326 : vector<4x1xf32> to vector<4x32xf32>
    %328 = arith.mulf %327, %52 : vector<4x32xf32>
    %329 = arith.addf %325, %328 : vector<4x32xf32>
    %330 = arith.mulf %313, %322 : vector<4x1xf32>
    %331 = vector.broadcast %330 : vector<4x1xf32> to vector<4x32xf32>
    %332 = arith.mulf %331, %109 : vector<4x32xf32>
    %333 = arith.addf %329, %332 : vector<4x32xf32>
    %334 = arith.mulf %315, %322 : vector<4x1xf32>
    %335 = vector.broadcast %334 : vector<4x1xf32> to vector<4x32xf32>
    %336 = arith.mulf %335, %177 : vector<4x32xf32>
    %337 = arith.addf %333, %336 : vector<4x32xf32>
    %338 = arith.mulf %317, %322 : vector<4x1xf32>
    %339 = vector.broadcast %338 : vector<4x1xf32> to vector<4x32xf32>
    %340 = arith.mulf %339, %256 : vector<4x32xf32>
    %341 = arith.addf %337, %340 : vector<4x32xf32>
    %cst_69 = arith.constant dense<0.000000e+00> : vector<4x32xf32>
    %342 = tpu.matmul %285, %3, %cst_69 {dimension_numbers = #tpu.dot_dimension_numbers<[1], [0], [0], [1], [0, 0, 1, 1], [], []>} : vector<4x32xf32>, vector<32x32xf32>, vector<4x32xf32> -> vector<4x32xf32>
    %cst_70 = arith.constant dense<0.000000e+00> : vector<4x32xf32>
    %343 = tpu.matmul %341, %4, %cst_70 {dimension_numbers = #tpu.dot_dimension_numbers<[1], [0], [0], [1], [0, 0, 1, 1], [], []>} : vector<4x32xf32>, vector<32x32xf32>, vector<4x32xf32> -> vector<4x32xf32>
    %344 = arith.addf %342, %343 : vector<4x32xf32>
    %345 = vector.broadcast %5 : vector<1x32xf32> to vector<4x32xf32>
    %346 = arith.addf %344, %345 : vector<4x32xf32>
    %c5 = arith.constant 5 : index
    %c0_71 = arith.constant 0 : index
    %c0_72 = arith.constant 0 : index
    %347 = vector.load %arg1[%c5, %c0_71, %c0_72] : memref<8x4x128xf32, #tpu.memory_space<vmem>>, vector<1x4x128xf32>
    %348 = vector.shape_cast %347 : vector<1x4x128xf32> to vector<4x128xf32>
    %cst_73 = arith.constant dense<0.000000e+00> : vector<4x128xf32>
    %349 = tpu.matmul %346, %0, %cst_73 {dimension_numbers = #tpu.dot_dimension_numbers<[1], [0], [0], [1], [0, 0, 1, 1], [], []>} : vector<4x32xf32>, vector<32x128xf32>, vector<4x128xf32> -> vector<4x128xf32>
    %350 = arith.addf %348, %349 : vector<4x128xf32>
    %351 = vector.extract_strided_slice %350 {offsets = [0, 0], sizes = [4, 32], strides = [1, 1]} : vector<4x128xf32> to vector<4x32xf32>
    %352 = arith.negf %351 : vector<4x32xf32>
    %353 = math.exp %352 : vector<4x32xf32>
    %cst_74 = arith.constant 1.000000e+00 : f32
    %354 = vector.broadcast %cst_74 : f32 to vector<4x32xf32>
    %355 = arith.addf %354, %353 : vector<4x32xf32>
    %356 = arith.divf %354, %355 : vector<4x32xf32>
    %357 = vector.extract_strided_slice %350 {offsets = [0, 32], sizes = [4, 32], strides = [1, 1]} : vector<4x128xf32> to vector<4x32xf32>
    %358 = arith.negf %357 : vector<4x32xf32>
    %359 = math.exp %358 : vector<4x32xf32>
    %cst_75 = arith.constant 1.000000e+00 : f32
    %360 = vector.broadcast %cst_75 : f32 to vector<4x32xf32>
    %361 = arith.addf %360, %359 : vector<4x32xf32>
    %362 = arith.divf %360, %361 : vector<4x32xf32>
    %363 = vector.extract_strided_slice %350 {offsets = [0, 64], sizes = [4, 32], strides = [1, 1]} : vector<4x128xf32> to vector<4x32xf32>
    %364 = math.tanh %363 : vector<4x32xf32>
    %365 = vector.extract_strided_slice %350 {offsets = [0, 96], sizes = [4, 32], strides = [1, 1]} : vector<4x128xf32> to vector<4x32xf32>
    %366 = arith.negf %365 : vector<4x32xf32>
    %367 = math.exp %366 : vector<4x32xf32>
    %cst_76 = arith.constant 1.000000e+00 : f32
    %368 = vector.broadcast %cst_76 : f32 to vector<4x32xf32>
    %369 = arith.addf %368, %367 : vector<4x32xf32>
    %370 = arith.divf %368, %369 : vector<4x32xf32>
    %371 = arith.mulf %362, %283 : vector<4x32xf32>
    %372 = arith.mulf %356, %364 : vector<4x32xf32>
    %373 = arith.addf %371, %372 : vector<4x32xf32>
    %374 = math.tanh %373 : vector<4x32xf32>
    %375 = arith.mulf %370, %374 : vector<4x32xf32>
    %cst_77 = arith.constant dense<0.000000e+00> : vector<4x32xf32>
    %376 = tpu.matmul %375, %1, %cst_77 {dimension_numbers = #tpu.dot_dimension_numbers<[1], [0], [0], [1], [0, 0, 1, 1], [], []>} : vector<4x32xf32>, vector<32x32xf32>, vector<4x32xf32> -> vector<4x32xf32>
    %377 = vector.broadcast %2 : vector<1x32xf32> to vector<4x32xf32>
    %378 = arith.addf %376, %377 : vector<4x32xf32>
    %379 = arith.mulf %6, %378 : vector<4x32xf32>
    %cst_78 = arith.constant dense<0.000000e+00> : vector<4xf32>
    %380 = vector.multi_reduction <add>, %379, %cst_78 [1] : vector<4x32xf32> to vector<4xf32>
    %381 = vector.shape_cast %380 : vector<4xf32> to vector<4x1xf32>
    %382 = arith.mulf %52, %378 : vector<4x32xf32>
    %cst_79 = arith.constant dense<0.000000e+00> : vector<4xf32>
    %383 = vector.multi_reduction <add>, %382, %cst_79 [1] : vector<4x32xf32> to vector<4xf32>
    %384 = vector.shape_cast %383 : vector<4xf32> to vector<4x1xf32>
    %385 = arith.mulf %109, %378 : vector<4x32xf32>
    %cst_80 = arith.constant dense<0.000000e+00> : vector<4xf32>
    %386 = vector.multi_reduction <add>, %385, %cst_80 [1] : vector<4x32xf32> to vector<4xf32>
    %387 = vector.shape_cast %386 : vector<4xf32> to vector<4x1xf32>
    %388 = arith.mulf %177, %378 : vector<4x32xf32>
    %cst_81 = arith.constant dense<0.000000e+00> : vector<4xf32>
    %389 = vector.multi_reduction <add>, %388, %cst_81 [1] : vector<4x32xf32> to vector<4xf32>
    %390 = vector.shape_cast %389 : vector<4xf32> to vector<4x1xf32>
    %391 = arith.mulf %256, %378 : vector<4x32xf32>
    %cst_82 = arith.constant dense<0.000000e+00> : vector<4xf32>
    %392 = vector.multi_reduction <add>, %391, %cst_82 [1] : vector<4x32xf32> to vector<4xf32>
    %393 = vector.shape_cast %392 : vector<4xf32> to vector<4x1xf32>
    %394 = arith.mulf %346, %378 : vector<4x32xf32>
    %cst_83 = arith.constant dense<0.000000e+00> : vector<4xf32>
    %395 = vector.multi_reduction <add>, %394, %cst_83 [1] : vector<4x32xf32> to vector<4xf32>
    %396 = vector.shape_cast %395 : vector<4xf32> to vector<4x1xf32>
    %397 = arith.maximumf %381, %384 : vector<4x1xf32>
    %398 = arith.maximumf %397, %387 : vector<4x1xf32>
    %399 = arith.maximumf %398, %390 : vector<4x1xf32>
    %400 = arith.maximumf %399, %393 : vector<4x1xf32>
    %401 = arith.maximumf %400, %396 : vector<4x1xf32>
    %402 = arith.subf %381, %401 : vector<4x1xf32>
    %403 = math.exp %402 : vector<4x1xf32>
    %404 = arith.subf %384, %401 : vector<4x1xf32>
    %405 = math.exp %404 : vector<4x1xf32>
    %406 = arith.subf %387, %401 : vector<4x1xf32>
    %407 = math.exp %406 : vector<4x1xf32>
    %408 = arith.subf %390, %401 : vector<4x1xf32>
    %409 = math.exp %408 : vector<4x1xf32>
    %410 = arith.subf %393, %401 : vector<4x1xf32>
    %411 = math.exp %410 : vector<4x1xf32>
    %412 = arith.subf %396, %401 : vector<4x1xf32>
    %413 = math.exp %412 : vector<4x1xf32>
    %414 = arith.addf %403, %405 : vector<4x1xf32>
    %415 = arith.addf %414, %407 : vector<4x1xf32>
    %416 = arith.addf %415, %409 : vector<4x1xf32>
    %417 = arith.addf %416, %411 : vector<4x1xf32>
    %418 = arith.addf %417, %413 : vector<4x1xf32>
    %419 = tpu.reciprocal %418 : vector<4x1xf32> -> vector<4x1xf32>
    %420 = arith.mulf %403, %419 : vector<4x1xf32>
    %421 = vector.broadcast %420 : vector<4x1xf32> to vector<4x32xf32>
    %422 = arith.mulf %421, %6 : vector<4x32xf32>
    %423 = arith.mulf %405, %419 : vector<4x1xf32>
    %424 = vector.broadcast %423 : vector<4x1xf32> to vector<4x32xf32>
    %425 = arith.mulf %424, %52 : vector<4x32xf32>
    %426 = arith.addf %422, %425 : vector<4x32xf32>
    %427 = arith.mulf %407, %419 : vector<4x1xf32>
    %428 = vector.broadcast %427 : vector<4x1xf32> to vector<4x32xf32>
    %429 = arith.mulf %428, %109 : vector<4x32xf32>
    %430 = arith.addf %426, %429 : vector<4x32xf32>
    %431 = arith.mulf %409, %419 : vector<4x1xf32>
    %432 = vector.broadcast %431 : vector<4x1xf32> to vector<4x32xf32>
    %433 = arith.mulf %432, %177 : vector<4x32xf32>
    %434 = arith.addf %430, %433 : vector<4x32xf32>
    %435 = arith.mulf %411, %419 : vector<4x1xf32>
    %436 = vector.broadcast %435 : vector<4x1xf32> to vector<4x32xf32>
    %437 = arith.mulf %436, %256 : vector<4x32xf32>
    %438 = arith.addf %434, %437 : vector<4x32xf32>
    %439 = arith.mulf %413, %419 : vector<4x1xf32>
    %440 = vector.broadcast %439 : vector<4x1xf32> to vector<4x32xf32>
    %441 = arith.mulf %440, %346 : vector<4x32xf32>
    %442 = arith.addf %438, %441 : vector<4x32xf32>
    %cst_84 = arith.constant dense<0.000000e+00> : vector<4x32xf32>
    %443 = tpu.matmul %375, %3, %cst_84 {dimension_numbers = #tpu.dot_dimension_numbers<[1], [0], [0], [1], [0, 0, 1, 1], [], []>} : vector<4x32xf32>, vector<32x32xf32>, vector<4x32xf32> -> vector<4x32xf32>
    %cst_85 = arith.constant dense<0.000000e+00> : vector<4x32xf32>
    %444 = tpu.matmul %442, %4, %cst_85 {dimension_numbers = #tpu.dot_dimension_numbers<[1], [0], [0], [1], [0, 0, 1, 1], [], []>} : vector<4x32xf32>, vector<32x32xf32>, vector<4x32xf32> -> vector<4x32xf32>
    %445 = arith.addf %443, %444 : vector<4x32xf32>
    %446 = vector.broadcast %5 : vector<1x32xf32> to vector<4x32xf32>
    %447 = arith.addf %445, %446 : vector<4x32xf32>
    %c6 = arith.constant 6 : index
    %c0_86 = arith.constant 0 : index
    %c0_87 = arith.constant 0 : index
    %448 = vector.load %arg1[%c6, %c0_86, %c0_87] : memref<8x4x128xf32, #tpu.memory_space<vmem>>, vector<1x4x128xf32>
    %449 = vector.shape_cast %448 : vector<1x4x128xf32> to vector<4x128xf32>
    %cst_88 = arith.constant dense<0.000000e+00> : vector<4x128xf32>
    %450 = tpu.matmul %447, %0, %cst_88 {dimension_numbers = #tpu.dot_dimension_numbers<[1], [0], [0], [1], [0, 0, 1, 1], [], []>} : vector<4x32xf32>, vector<32x128xf32>, vector<4x128xf32> -> vector<4x128xf32>
    %451 = arith.addf %449, %450 : vector<4x128xf32>
    %452 = vector.extract_strided_slice %451 {offsets = [0, 0], sizes = [4, 32], strides = [1, 1]} : vector<4x128xf32> to vector<4x32xf32>
    %453 = arith.negf %452 : vector<4x32xf32>
    %454 = math.exp %453 : vector<4x32xf32>
    %cst_89 = arith.constant 1.000000e+00 : f32
    %455 = vector.broadcast %cst_89 : f32 to vector<4x32xf32>
    %456 = arith.addf %455, %454 : vector<4x32xf32>
    %457 = arith.divf %455, %456 : vector<4x32xf32>
    %458 = vector.extract_strided_slice %451 {offsets = [0, 32], sizes = [4, 32], strides = [1, 1]} : vector<4x128xf32> to vector<4x32xf32>
    %459 = arith.negf %458 : vector<4x32xf32>
    %460 = math.exp %459 : vector<4x32xf32>
    %cst_90 = arith.constant 1.000000e+00 : f32
    %461 = vector.broadcast %cst_90 : f32 to vector<4x32xf32>
    %462 = arith.addf %461, %460 : vector<4x32xf32>
    %463 = arith.divf %461, %462 : vector<4x32xf32>
    %464 = vector.extract_strided_slice %451 {offsets = [0, 64], sizes = [4, 32], strides = [1, 1]} : vector<4x128xf32> to vector<4x32xf32>
    %465 = math.tanh %464 : vector<4x32xf32>
    %466 = vector.extract_strided_slice %451 {offsets = [0, 96], sizes = [4, 32], strides = [1, 1]} : vector<4x128xf32> to vector<4x32xf32>
    %467 = arith.negf %466 : vector<4x32xf32>
    %468 = math.exp %467 : vector<4x32xf32>
    %cst_91 = arith.constant 1.000000e+00 : f32
    %469 = vector.broadcast %cst_91 : f32 to vector<4x32xf32>
    %470 = arith.addf %469, %468 : vector<4x32xf32>
    %471 = arith.divf %469, %470 : vector<4x32xf32>
    %472 = arith.mulf %463, %373 : vector<4x32xf32>
    %473 = arith.mulf %457, %465 : vector<4x32xf32>
    %474 = arith.addf %472, %473 : vector<4x32xf32>
    %475 = math.tanh %474 : vector<4x32xf32>
    %476 = arith.mulf %471, %475 : vector<4x32xf32>
    %cst_92 = arith.constant dense<0.000000e+00> : vector<4x32xf32>
    %477 = tpu.matmul %476, %1, %cst_92 {dimension_numbers = #tpu.dot_dimension_numbers<[1], [0], [0], [1], [0, 0, 1, 1], [], []>} : vector<4x32xf32>, vector<32x32xf32>, vector<4x32xf32> -> vector<4x32xf32>
    %478 = vector.broadcast %2 : vector<1x32xf32> to vector<4x32xf32>
    %479 = arith.addf %477, %478 : vector<4x32xf32>
    %480 = arith.mulf %6, %479 : vector<4x32xf32>
    %cst_93 = arith.constant dense<0.000000e+00> : vector<4xf32>
    %481 = vector.multi_reduction <add>, %480, %cst_93 [1] : vector<4x32xf32> to vector<4xf32>
    %482 = vector.shape_cast %481 : vector<4xf32> to vector<4x1xf32>
    %483 = arith.mulf %52, %479 : vector<4x32xf32>
    %cst_94 = arith.constant dense<0.000000e+00> : vector<4xf32>
    %484 = vector.multi_reduction <add>, %483, %cst_94 [1] : vector<4x32xf32> to vector<4xf32>
    %485 = vector.shape_cast %484 : vector<4xf32> to vector<4x1xf32>
    %486 = arith.mulf %109, %479 : vector<4x32xf32>
    %cst_95 = arith.constant dense<0.000000e+00> : vector<4xf32>
    %487 = vector.multi_reduction <add>, %486, %cst_95 [1] : vector<4x32xf32> to vector<4xf32>
    %488 = vector.shape_cast %487 : vector<4xf32> to vector<4x1xf32>
    %489 = arith.mulf %177, %479 : vector<4x32xf32>
    %cst_96 = arith.constant dense<0.000000e+00> : vector<4xf32>
    %490 = vector.multi_reduction <add>, %489, %cst_96 [1] : vector<4x32xf32> to vector<4xf32>
    %491 = vector.shape_cast %490 : vector<4xf32> to vector<4x1xf32>
    %492 = arith.mulf %256, %479 : vector<4x32xf32>
    %cst_97 = arith.constant dense<0.000000e+00> : vector<4xf32>
    %493 = vector.multi_reduction <add>, %492, %cst_97 [1] : vector<4x32xf32> to vector<4xf32>
    %494 = vector.shape_cast %493 : vector<4xf32> to vector<4x1xf32>
    %495 = arith.mulf %346, %479 : vector<4x32xf32>
    %cst_98 = arith.constant dense<0.000000e+00> : vector<4xf32>
    %496 = vector.multi_reduction <add>, %495, %cst_98 [1] : vector<4x32xf32> to vector<4xf32>
    %497 = vector.shape_cast %496 : vector<4xf32> to vector<4x1xf32>
    %498 = arith.mulf %447, %479 : vector<4x32xf32>
    %cst_99 = arith.constant dense<0.000000e+00> : vector<4xf32>
    %499 = vector.multi_reduction <add>, %498, %cst_99 [1] : vector<4x32xf32> to vector<4xf32>
    %500 = vector.shape_cast %499 : vector<4xf32> to vector<4x1xf32>
    %501 = arith.maximumf %482, %485 : vector<4x1xf32>
    %502 = arith.maximumf %501, %488 : vector<4x1xf32>
    %503 = arith.maximumf %502, %491 : vector<4x1xf32>
    %504 = arith.maximumf %503, %494 : vector<4x1xf32>
    %505 = arith.maximumf %504, %497 : vector<4x1xf32>
    %506 = arith.maximumf %505, %500 : vector<4x1xf32>
    %507 = arith.subf %482, %506 : vector<4x1xf32>
    %508 = math.exp %507 : vector<4x1xf32>
    %509 = arith.subf %485, %506 : vector<4x1xf32>
    %510 = math.exp %509 : vector<4x1xf32>
    %511 = arith.subf %488, %506 : vector<4x1xf32>
    %512 = math.exp %511 : vector<4x1xf32>
    %513 = arith.subf %491, %506 : vector<4x1xf32>
    %514 = math.exp %513 : vector<4x1xf32>
    %515 = arith.subf %494, %506 : vector<4x1xf32>
    %516 = math.exp %515 : vector<4x1xf32>
    %517 = arith.subf %497, %506 : vector<4x1xf32>
    %518 = math.exp %517 : vector<4x1xf32>
    %519 = arith.subf %500, %506 : vector<4x1xf32>
    %520 = math.exp %519 : vector<4x1xf32>
    %521 = arith.addf %508, %510 : vector<4x1xf32>
    %522 = arith.addf %521, %512 : vector<4x1xf32>
    %523 = arith.addf %522, %514 : vector<4x1xf32>
    %524 = arith.addf %523, %516 : vector<4x1xf32>
    %525 = arith.addf %524, %518 : vector<4x1xf32>
    %526 = arith.addf %525, %520 : vector<4x1xf32>
    %527 = tpu.reciprocal %526 : vector<4x1xf32> -> vector<4x1xf32>
    %528 = arith.mulf %508, %527 : vector<4x1xf32>
    %529 = vector.broadcast %528 : vector<4x1xf32> to vector<4x32xf32>
    %530 = arith.mulf %529, %6 : vector<4x32xf32>
    %531 = arith.mulf %510, %527 : vector<4x1xf32>
    %532 = vector.broadcast %531 : vector<4x1xf32> to vector<4x32xf32>
    %533 = arith.mulf %532, %52 : vector<4x32xf32>
    %534 = arith.addf %530, %533 : vector<4x32xf32>
    %535 = arith.mulf %512, %527 : vector<4x1xf32>
    %536 = vector.broadcast %535 : vector<4x1xf32> to vector<4x32xf32>
    %537 = arith.mulf %536, %109 : vector<4x32xf32>
    %538 = arith.addf %534, %537 : vector<4x32xf32>
    %539 = arith.mulf %514, %527 : vector<4x1xf32>
    %540 = vector.broadcast %539 : vector<4x1xf32> to vector<4x32xf32>
    %541 = arith.mulf %540, %177 : vector<4x32xf32>
    %542 = arith.addf %538, %541 : vector<4x32xf32>
    %543 = arith.mulf %516, %527 : vector<4x1xf32>
    %544 = vector.broadcast %543 : vector<4x1xf32> to vector<4x32xf32>
    %545 = arith.mulf %544, %256 : vector<4x32xf32>
    %546 = arith.addf %542, %545 : vector<4x32xf32>
    %547 = arith.mulf %518, %527 : vector<4x1xf32>
    %548 = vector.broadcast %547 : vector<4x1xf32> to vector<4x32xf32>
    %549 = arith.mulf %548, %346 : vector<4x32xf32>
    %550 = arith.addf %546, %549 : vector<4x32xf32>
    %551 = arith.mulf %520, %527 : vector<4x1xf32>
    %552 = vector.broadcast %551 : vector<4x1xf32> to vector<4x32xf32>
    %553 = arith.mulf %552, %447 : vector<4x32xf32>
    %554 = arith.addf %550, %553 : vector<4x32xf32>
    %cst_100 = arith.constant dense<0.000000e+00> : vector<4x32xf32>
    %555 = tpu.matmul %476, %3, %cst_100 {dimension_numbers = #tpu.dot_dimension_numbers<[1], [0], [0], [1], [0, 0, 1, 1], [], []>} : vector<4x32xf32>, vector<32x32xf32>, vector<4x32xf32> -> vector<4x32xf32>
    %cst_101 = arith.constant dense<0.000000e+00> : vector<4x32xf32>
    %556 = tpu.matmul %554, %4, %cst_101 {dimension_numbers = #tpu.dot_dimension_numbers<[1], [0], [0], [1], [0, 0, 1, 1], [], []>} : vector<4x32xf32>, vector<32x32xf32>, vector<4x32xf32> -> vector<4x32xf32>
    %557 = arith.addf %555, %556 : vector<4x32xf32>
    %558 = vector.broadcast %5 : vector<1x32xf32> to vector<4x32xf32>
    %559 = arith.addf %557, %558 : vector<4x32xf32>
    %c7 = arith.constant 7 : index
    %c0_102 = arith.constant 0 : index
    %c0_103 = arith.constant 0 : index
    %560 = vector.load %arg1[%c7, %c0_102, %c0_103] : memref<8x4x128xf32, #tpu.memory_space<vmem>>, vector<1x4x128xf32>
    %561 = vector.shape_cast %560 : vector<1x4x128xf32> to vector<4x128xf32>
    %cst_104 = arith.constant dense<0.000000e+00> : vector<4x128xf32>
    %562 = tpu.matmul %559, %0, %cst_104 {dimension_numbers = #tpu.dot_dimension_numbers<[1], [0], [0], [1], [0, 0, 1, 1], [], []>} : vector<4x32xf32>, vector<32x128xf32>, vector<4x128xf32> -> vector<4x128xf32>
    %563 = arith.addf %561, %562 : vector<4x128xf32>
    %564 = vector.extract_strided_slice %563 {offsets = [0, 0], sizes = [4, 32], strides = [1, 1]} : vector<4x128xf32> to vector<4x32xf32>
    %565 = arith.negf %564 : vector<4x32xf32>
    %566 = math.exp %565 : vector<4x32xf32>
    %cst_105 = arith.constant 1.000000e+00 : f32
    %567 = vector.broadcast %cst_105 : f32 to vector<4x32xf32>
    %568 = arith.addf %567, %566 : vector<4x32xf32>
    %569 = arith.divf %567, %568 : vector<4x32xf32>
    %570 = vector.extract_strided_slice %563 {offsets = [0, 32], sizes = [4, 32], strides = [1, 1]} : vector<4x128xf32> to vector<4x32xf32>
    %571 = arith.negf %570 : vector<4x32xf32>
    %572 = math.exp %571 : vector<4x32xf32>
    %cst_106 = arith.constant 1.000000e+00 : f32
    %573 = vector.broadcast %cst_106 : f32 to vector<4x32xf32>
    %574 = arith.addf %573, %572 : vector<4x32xf32>
    %575 = arith.divf %573, %574 : vector<4x32xf32>
    %576 = vector.extract_strided_slice %563 {offsets = [0, 64], sizes = [4, 32], strides = [1, 1]} : vector<4x128xf32> to vector<4x32xf32>
    %577 = math.tanh %576 : vector<4x32xf32>
    %578 = vector.extract_strided_slice %563 {offsets = [0, 96], sizes = [4, 32], strides = [1, 1]} : vector<4x128xf32> to vector<4x32xf32>
    %579 = arith.negf %578 : vector<4x32xf32>
    %580 = math.exp %579 : vector<4x32xf32>
    %cst_107 = arith.constant 1.000000e+00 : f32
    %581 = vector.broadcast %cst_107 : f32 to vector<4x32xf32>
    %582 = arith.addf %581, %580 : vector<4x32xf32>
    %583 = arith.divf %581, %582 : vector<4x32xf32>
    %584 = arith.mulf %575, %474 : vector<4x32xf32>
    %585 = arith.mulf %569, %577 : vector<4x32xf32>
    %586 = arith.addf %584, %585 : vector<4x32xf32>
    %587 = math.tanh %586 : vector<4x32xf32>
    %588 = arith.mulf %583, %587 : vector<4x32xf32>
    %c0_108 = arith.constant 0 : index
    %c0_109 = arith.constant 0 : index
    %589 = vector.load %arg7[%c0_108, %c0_109] : memref<1x32xf32, #tpu.memory_space<vmem>>, vector<1x32xf32>
    %590 = vector.broadcast %589 : vector<1x32xf32> to vector<4x32xf32>
    %591 = arith.mulf %588, %590 : vector<4x32xf32>
    %cst_110 = arith.constant dense<0.000000e+00> : vector<4xf32>
    %592 = vector.multi_reduction <add>, %591, %cst_110 [1] : vector<4x32xf32> to vector<4xf32>
    %593 = vector.shape_cast %592 : vector<4xf32> to vector<4x1xf32>
    %c0_111 = arith.constant 0 : index
    %c0_112 = arith.constant 0 : index
    %594 = vector.load %arg8[%c0_111, %c0_112] : memref<1x1xf32, #tpu.memory_space<vmem>>, vector<1x1xf32>
    %595 = vector.broadcast %594 : vector<1x1xf32> to vector<4x1xf32>
    %596 = arith.addf %593, %595 : vector<4x1xf32>
    %597 = arith.negf %596 : vector<4x1xf32>
    %598 = math.exp %597 : vector<4x1xf32>
    %cst_113 = arith.constant 1.000000e+00 : f32
    %599 = vector.broadcast %cst_113 : f32 to vector<4x1xf32>
    %600 = arith.addf %599, %598 : vector<4x1xf32>
    %601 = arith.divf %599, %600 : vector<4x1xf32>
    %c0_114 = arith.constant 0 : index
    %c0_115 = arith.constant 0 : index
    %602 = vector.load %arg9[%c0_114, %c0_115] : memref<4x1xf32, #tpu.memory_space<vmem>>, vector<4x1xf32>
    tpu.vector_store %arg9[%c0_114, %c0_115], %601 {strides = array<i32>} : memref<4x1xf32, #tpu.memory_space<vmem>>, vector<4x1xf32>,
    %c0_116 = arith.constant 0 : index
    %c0_117 = arith.constant 0 : index
    %603 = vector.load %arg10[%c0_116, %c0_117] : memref<4x32xf32, #tpu.memory_space<vmem>>, vector<4x32xf32>
    tpu.vector_store %arg10[%c0_116, %c0_117], %588 {strides = array<i32>} : memref<4x32xf32, #tpu.memory_space<vmem>>, vector<4x32xf32>,
    return
  }
  func.func @transform_0(%arg0: i32) -> (i32, i32, i32) {
    %c0_i32 = arith.constant 0 : i32
    %c0_i32_0 = arith.constant 0 : i32
    %c0_i32_1 = arith.constant 0 : i32
    return %c0_i32, %arg0, %c0_i32_0 : i32, i32, i32
  }
  func.func @transform_1(%arg0: i32) -> (i32, i32) {
    %c0_i32 = arith.constant 0 : i32
    %c0_i32_0 = arith.constant 0 : i32
    %c0_i32_1 = arith.constant 0 : i32
    return %c0_i32, %c0_i32_0 : i32, i32
  }
  func.func @transform_2(%arg0: i32) -> (i32, i32) {
    %c0_i32 = arith.constant 0 : i32
    %c0_i32_0 = arith.constant 0 : i32
    %c0_i32_1 = arith.constant 0 : i32
    return %c0_i32, %c0_i32_0 : i32, i32
  }
  func.func @transform_3(%arg0: i32) -> (i32, i32) {
    %c0_i32 = arith.constant 0 : i32
    %c0_i32_0 = arith.constant 0 : i32
    %c0_i32_1 = arith.constant 0 : i32
    return %c0_i32, %c0_i32_0 : i32, i32
  }
  func.func @transform_4(%arg0: i32) -> (i32, i32) {
    %c0_i32 = arith.constant 0 : i32
    %c0_i32_0 = arith.constant 0 : i32
    %c0_i32_1 = arith.constant 0 : i32
    return %c0_i32, %c0_i32_0 : i32, i32
  }
  func.func @transform_5(%arg0: i32) -> (i32, i32) {
    %c0_i32 = arith.constant 0 : i32
    %c0_i32_0 = arith.constant 0 : i32
    %c0_i32_1 = arith.constant 0 : i32
    return %c0_i32, %c0_i32_0 : i32, i32
  }
  func.func @transform_6(%arg0: i32) -> (i32, i32) {
    %c0_i32 = arith.constant 0 : i32
    %c0_i32_0 = arith.constant 0 : i32
    %c0_i32_1 = arith.constant 0 : i32
    return %c0_i32, %c0_i32_0 : i32, i32
  }
  func.func @transform_7(%arg0: i32) -> (i32, i32) {
    %c0_i32 = arith.constant 0 : i32
    %c0_i32_0 = arith.constant 0 : i32
    %c0_i32_1 = arith.constant 0 : i32
    return %c0_i32, %c0_i32_0 : i32, i32
  }
  func.func @transform_8(%arg0: i32) -> (i32, i32) {
    %c0_i32 = arith.constant 0 : i32
    %c0_i32_0 = arith.constant 0 : i32
    return %arg0, %c0_i32 : i32, i32
  }
  func.func @transform_9(%arg0: i32) -> (i32, i32) {
    %c0_i32 = arith.constant 0 : i32
    %c0_i32_0 = arith.constant 0 : i32
    return %arg0, %c0_i32 : i32, i32
  }
}

</mosaic_0001>

<bundles_post_ra>
// kernel: attention_model_forward.1
= control target key start
LH: loop header
LB: loop body
LE: loop exit
PB: predicated region body
PF: predicated region fallthrough
CT: control target
= control target key end

     0   :  { %s2331_s0 = inlined_call_operand.vmem [shape: f32[8,4,128], index: 0, kind: input, shape index: {}]   ;;  %s2332_s1 = inlined_call_operand.hbm [shape: f32[32,128], index: 1, kind: input, shape index: {}]   ;;  %s2333_s2 = inlined_call_operand.hbm [shape: f32[32,32], index: 2, kind: input, shape index: {}]   ;;  %s2334_s3 = inlined_call_operand.vmem [shape: f32[1,32], index: 3, kind: input, shape index: {}]   ;;  %s2335_s4 = inlined_call_operand.vmem [shape: f32[64,32], index: 4, kind: input, shape index: {}]   ;;  %s2336_s5 = inlined_call_operand.vmem [shape: f32[1,32], index: 5, kind: input, shape index: {}]   ;;  %s2337_s6 = inlined_call_operand.vmem [shape: f32[1,32], index: 6, kind: input, shape index: {}]   ;;  %s2338_s7 = inlined_call_operand.<no memory space> [shape: f32[1,1], index: 7, kind: input, shape index: {}]   ;;  %s2339_s8 = inlined_call_operand.vmem [shape: f32[4,1], index: 8, kind: output, shape index: {0}]   ;;  %s2340_s9 = inlined_call_operand.hbm [shape: f32[4,32], index: 9, kind: output, shape index: {1}]  }
   0x1   :  { %v15_v0 = vstv %s2338_s7 }
   0x2   :  { %16 = vst [vmem:[#allocation2] sm:$0x1] %v15_v0 }
   0x3   :  { %17 = vsyncpa [#allocation4], 0 }
   0x4   :  { %18 = vsyncpa [#allocation7], 0 }
   0x5   :  { %19 = vsyncpa [#allocation5], 0  ;;  %s26_s13 = sshll.u32 %s2332_s1, 4  ;;  %s1841_s14 = smov [#allocation3]   ;;  %s27_s13 = int_to_ptr.hbm [resolvable:$true] %s26_s13 }
   0x6   :  { %s28_s15 = sshll.u32 %s1841_s14, 4  ;;  %s39_s18 = sshll.u32 %s2333_s2, 4  ;;  %s29_s15 = int_to_ptr.vmem [resolvable:$true] %s28_s15  ;;  %s40_s18 = int_to_ptr.hbm [resolvable:$true] %s39_s18 }
   0x7   :  { %s1842_s19 = smov 128   ;;  %s1843_s20 = smov 8  }
   0x8   :  { %34 = dma.hbm_to_vmem [thread:$0]  %s27_s13, 512, %s29_s15, [#allocation4], %s1842_s19, %s1842_s19, %s1843_s20  }
   0x9   :  { %s1844_s7 = smov [#allocation6]  }
   0xa   :  { %s41_s21 = sshll.u32 %s1844_s7, 4  ;;  %s42_s21 = int_to_ptr.vmem [resolvable:$true] %s41_s21 }
   0xb   :  { %47 = dma.hbm_to_vmem [thread:$0]  %s40_s18, 512, %s42_s21, [#allocation7], %s1842_s19, %s1842_s19, %s1843_s20  }
   0xc   :  { %1835 = dma.done.wait [#allocation4], 512  }
   0xd   :  { %1836 = vsyncadd [#allocation4], 4294966784 }
   0xe   :  { %1837 = dma.done.wait [#allocation7], 512  }
   0xf   :  { %1838 = vsyncadd [#allocation7], 4294966784  ;;  %v1909_v1 = vld [vmem:[#allocation3 + $0x18] sm:$0xff]  ;;  %v1911_v2 = vld [vmem:[#allocation3 + $0x10] sm:$0xff]  ;;  %v1845_v5 = vmov 0.0   ;;  %s1846_s22 = smov 64  }
  0x10   :  { %101 = vmatpush.msra.mxu0 %v1909_v1  ;;  %v1914_v3 = vld [vmem:[#allocation3 + $0x8] sm:$0xff]  ;;  %v1917_v4 = vld [vmem:[#allocation3] sm:$0xff]  ;;  %s1847_s23 = smov 32   ;;  %v1938_v29 = vld [vmem:[#allocation6 + $0x18] sm:$0xff]  ;;  %vm85_vm4 = vcmask 261120   ;;  %vm176_vm5 = vcmask 257024  }
  0x11   :  { %v84_v6 = vld [vmem:[%s2331_s0] sm:$0xf]  ;;  %v1943_v30 = vld [vmem:[%s2335_s4 + $0x18] sm:$0xff]  ;;  %167 = vmatpush.msra.mxu1 %v1938_v29  ;;  %v1952_v32 = vld [vmem:[%s2335_s4 + $0x10] sm:$0xff]  ;;  %s1848_s24 = smov 96   ;;  %s1545_s26 = sshll.u32 %s2340_s9, 4  ;;  %s1546_s26 = int_to_ptr.hbm [resolvable:$true] %s1545_s26 }
  0x12   :  { %102 = vmatpush.msra.mxu0 %v1911_v2  ;;  %v1945_v31 = vld [vmem:[#allocation6 + $0x10] sm:$0xff]  ;;  %234 = vmatpush.msra.mxu3 %v1943_v30  ;;  %v1954_v33 = vld [vmem:[#allocation6 + $0x8] sm:$0xff]  ;;  %v1963_v35 = vld [vmem:[#allocation6] sm:$0xff] }
  0x13   :  { %v1959_v34 = vld [vmem:[%s2335_s4 + $0x8] sm:$0xff]  ;;  %168 = vmatpush.msra.mxu1 %v1945_v31  ;;  %v1968_v36 = vld [vmem:[%s2335_s4] sm:$0xff]  ;;  %v2003_v45 = vld [vmem:[%s2335_s4 + $0x38] sm:$0xff] }
  0x14   :  { %103 = vmatpush.msra.mxu0 %v1914_v3  ;;  %235 = vmatpush.msra.mxu3 %v1952_v32  ;;  %v1996_v40 = vld [vmem:[%s2334_s3] ss:$0 sm:$0xff]  ;;  %v2008_v46 = vld [vmem:[%s2335_s4 + $0x30] sm:$0xff]  ;;  %v2014_v47 = vld [vmem:[%s2335_s4 + $0x28] sm:$0xff] }
  0x15   :  { %169 = vmatpush.msra.mxu1 %v1954_v33  ;;  %214 = vmatpush.msra.mxu2 %v2003_v45  ;;  %v2020_v48 = vld [vmem:[%s2335_s4 + $0x20] sm:$0xff] }
  0x16   :  { %104 = vmatpush.msra.mxu0 %v1917_v4  ;;  %236 = vmatpush.msra.mxu3 %v1959_v34 }
  0x17   :  { %105 = vmatmul.f32.vlgmr.msra.gmra.mxu0 %v1845_v5  ;;  %170 = vmatpush.msra.mxu1 %v1963_v35  ;;  %v2036_v5 = vld [vmem:[%s2336_s5] ss:$0 sm:$0xff] }
  0x18   :  { %263 = vmatpush.msrb.mxu0 %v1909_v1  ;;  %237 = vmatpush.msra.mxu3 %v1968_v36 }
  0x19   :  { %326 = vmatpush.msrb.mxu1 %v1938_v29  ;;  %215 = vmatpush.msra.mxu2 %v2008_v46 }
  0x1a   :  { %264 = vmatpush.msrb.mxu0 %v1911_v2  ;;  %404 = vmatpush.msrb.mxu3 %v1943_v30 }
  0x1b   :  { %327 = vmatpush.msrb.mxu1 %v1945_v31  ;;  %216 = vmatpush.msra.mxu2 %v2014_v47 }
  0x1c   :  { %265 = vmatpush.msrb.mxu0 %v1914_v3  ;;  %405 = vmatpush.msrb.mxu3 %v1952_v32 }
  0x1d   :  { %328 = vmatpush.msrb.mxu1 %v1954_v33  ;;  %217 = vmatpush.msra.mxu2 %v2020_v48 }
  0x1e   :  { %266 = vmatpush.msrb.mxu0 %v1917_v4  ;;  %406 = vmatpush.msrb.mxu3 %v1959_v34 }
  0x1f   :  { %329 = vmatpush.msrb.mxu1 %v1963_v35  ;;  %384 = vmatpush.msrb.mxu2 %v2003_v45 }
  0x20   :  { %430 = vmatpush.msra.mxu0 %v1909_v1  ;;  %407 = vmatpush.msrb.mxu3 %v1968_v36 }
  0x21   :  { %385 = vmatpush.msrb.mxu2 %v2008_v46 }
  0x22   :  { %431 = vmatpush.msra.mxu0 %v1911_v2 }
  0x23   :  { %386 = vmatpush.msrb.mxu2 %v2014_v47 }
  0x24   :  { %432 = vmatpush.msra.mxu0 %v1914_v3 }
  0x25   :  { %387 = vmatpush.msrb.mxu2 %v2020_v48 }
  0x26   :  { %433 = vmatpush.msra.mxu0 %v1917_v4 }
  0x94   :  { %v106_v7 = vpop.f32.mrf.mxu0 }
  0x95   :  { %v109_v8 = vadd.f32 %v106_v7, %v84_v6 }
  0x97   :  { %1615 = vtanh.f32 %v109_v8  ;;  %v1558_v10 = vmul.f32 -1.442695, %v109_v8 }
  0x99   :  { %1617 = vpow2.f32 %v1558_v10  ;;  %v1562_v10 = vld [vmem:[%s2331_s0 + $0x4] sm:$0xf] }
  0x9d   :  { %v1616_v9 = vpop.eup %1615 }
  0x9e   :  { %132 = vrot.lane.b32.xlu0 %v1616_v9, %s1846_s22 }
  0x9f   :  { %v1618_v11 = vpop.eup %1617 }
  0xa0   :  { %v113_v12 = vadd.f32 1.0, %v1618_v11 }
  0xa2   :  { %1619 = vrcp.f32 %v113_v12  ;;  %v125_v18 = vand.u32 2147483648, %v113_v12  ;;  %vm119_vm1 = vweird.f32 %v113_v12  ;;  %v123_v19 = vand.u32 2147483647, %v113_v12 }
  0xa4   :  { %v126_v21 = vor.u32 1.1754944e-38, %v125_v18  ;;  %vm124_vm3 = vcmp.eq.f32.partialorder %v123_v19, 8.507059e+37 }
  0xa8   :  { %v1620_v13 = vpop.eup %1619 }
  0xa9   :  { %v115_v14 = vmul.f32 %v1620_v13, %v113_v12  ;;  %vm120_vm0 = vweird.f32 %v1620_v13 }
  0xaa   :  { %vm121_vm2 = vmor %vm119_vm1, %vm120_vm0 }
  0xab   :  { %v116_v15 = vsub.f32 1.0, %v115_v14 }
  0xad   :  { %v117_v16 = vmul.f32 %v1620_v13, %v116_v15 }
  0xaf   :  { %v118_v17 = vadd.f32 %v1620_v13, %v117_v16 }
  0xb1   :  { %v122_v20 = vsel %vm121_vm2, %v1620_v13, %v118_v17 }
  0xb2   :  { %v127_v23 = vsel %vm124_vm3, %v126_v21, %v122_v20 }
  0xb3   :  { %v130_v25 = vmul.f32 0.0, %v127_v23 }
 0x110   :  { %v133_v22 = vpop.permute.xlu0 %132 }
 0x111   :  { %v135_v24 = vmul.f32 %v133_v22, %v127_v23 }
 0x113   :  { %137 = vrot.lane.b32.xlu0 %v135_v24, %s1847_s23 }
 0x185   :  { %v138_v26 = vpop.permute.xlu0 %137 }
 0x186   :  { %v1934_v27 = vadd.f32 %v138_v26, %v130_v25 }
 0x188   :  { %1621 = vtanh.f32 %v1934_v27 }
 0x18e   :  { %v1622_v28 = vpop.eup %1621 }
 0x18f   :  { %143 = vrot.lane.b32.xlu1 %v1622_v28, %s1846_s22 }
 0x201   :  { %v144_v37 = vpop.permute.xlu1 %143 }
 0x202   :  { %v146_v38 = vmul.f32 %v144_v37, %v127_v23 }
 0x204   :  { %151 = vrot.lane.b32.xlu1 %v146_v38, %s1847_s23 }
 0x276   :  { %v152_v39 = vpop.permute.xlu1 %151 }
 0x277   :  { %1559 = vmatmul.msk.f32.vlgmr.msra.gmra.mxu1 %vm85_vm4, %v152_v39  ;;  %1561 = vmatmul.msk.f32.vlgmr.msra.gmra.mxu3 %vm85_vm4, %v152_v39 }
 0x278   :  { %493 = vmatpush.msra.mxu1 %v1938_v29  ;;  %583 = vmatpush.msra.mxu3 %v1943_v30 }
 0x27a   :  { %494 = vmatpush.msra.mxu1 %v1945_v31  ;;  %584 = vmatpush.msra.mxu3 %v1952_v32 }
 0x27c   :  { %495 = vmatpush.msra.mxu1 %v1954_v33  ;;  %585 = vmatpush.msra.mxu3 %v1959_v34 }
 0x27e   :  { %496 = vmatpush.msra.mxu1 %v1963_v35  ;;  %586 = vmatpush.msra.mxu3 %v1968_v36 }
 0x2f4   :  { %v172_v41 = vpop.f32.mrf.mxu1 }
 0x2f5   :  { %v173_v42 = vadd.f32 %v1996_v40, %v172_v41 }
 0x2f7   :  { %v175_v43 = vmul.f32 0.0, %v173_v42 }
 0x2f9   :  { %v177_v44 = vsel %vm176_vm5, %v175_v43, 0.0 }
 0x2fa   :  { %178 = vadd.xlane.f32.xlu2 %v177_v44  ;;  %v239_v6 = vpop.f32.mrf.mxu3 }
 0x36d   :  { %v179_v49 = vpop.xlane.xlu2 %178 }
 0x36e   :  { %v180_v50 = vsub.f32 %v179_v49, %v179_v49 }
 0x370   :  { %v181_v51 = vmul.f32 1.442695, %v180_v50 }
 0x372   :  { %1623 = vpow2.f32 %v181_v51 }
 0x378   :  { %v1624_v52 = vpop.eup %1623 }
 0x379   :  { %1625 = vrcp.f32 %v1624_v52  ;;  %v194_v56 = vand.u32 2147483648, %v1624_v52  ;;  %v192_v58 = vand.u32 2147483647, %v1624_v52  ;;  %vm188_vm7 = vweird.f32 %v1624_v52 }
 0x37b   :  { %v195_v60 = vor.u32 1.1754944e-38, %v194_v56  ;;  %vm193_vm9 = vcmp.eq.f32.partialorder %v192_v58, 8.507059e+37 }
 0x37f   :  { %v1626_v53 = vpop.eup %1625 }
 0x380   :  { %v184_v54 = vmul.f32 %v1626_v53, %v1624_v52  ;;  %vm189_vm6 = vweird.f32 %v1626_v53 }
 0x381   :  { %vm190_vm8 = vmor %vm188_vm7, %vm189_vm6 }
 0x382   :  { %v185_v55 = vsub.f32 1.0, %v184_v54 }
 0x384   :  { %v186_v57 = vmul.f32 %v1626_v53, %v185_v55 }
 0x386   :  { %v187_v59 = vadd.f32 %v1626_v53, %v186_v57 }
 0x388   :  { %v191_v61 = vsel %vm190_vm8, %v1626_v53, %v187_v59 }
 0x389   :  { %v196_v62 = vsel %vm193_vm9, %v195_v60, %v191_v61 }
 0x38a   :  { %v197_v63 = vmul.f32 %v1624_v52, %v196_v62 }
 0x38c   :  { %v198_v0 = vmul.f32 0.0, %v197_v63 }
 0x38e   :  { %1560 = vmatmul.msk.f32.vlgmr.msra.gmra.mxu2 %vm85_vm4, %v198_v0 }
 0x38f   :  { %563 = vmatpush.msra.mxu2 %v2003_v45 }
 0x391   :  { %564 = vmatpush.msra.mxu2 %v2008_v46 }
 0x393   :  { %565 = vmatpush.msra.mxu2 %v2014_v47 }
 0x395   :  { %566 = vmatpush.msra.mxu2 %v2020_v48 }
 0x411   :  { %v219_v7 = vpop.f32.mrf.mxu2 }
 0x412   :  { %v240_v8 = vadd.f32 %v239_v6, %v219_v7 }
 0x414   :  { %v2039_v9 = vadd.f32 %v2036_v5, %v240_v8 }
 0x416   :  { %1563 = vmatmul.msk.f32.vlgmr.msrb.gmra.mxu0 %vm85_vm4, %v2039_v9 }
 0x417   :  { %609 = vmatpush.msrb.mxu0 %v1909_v1 }
 0x419   :  { %610 = vmatpush.msrb.mxu0 %v1911_v2 }
 0x41b   :  { %611 = vmatpush.msrb.mxu0 %v1914_v3 }
 0x41d   :  { %612 = vmatpush.msrb.mxu0 %v1917_v4 }
 0x493   :  { %v268_v11 = vpop.f32.mrf.mxu0 }
 0x494   :  { %v271_v12 = vadd.f32 %v1562_v10, %v268_v11 }
 0x496   :  { %1627 = vtanh.f32 %v271_v12  ;;  %v1564_v14 = vmul.f32 -1.442695, %v271_v12 }
 0x498   :  { %1629 = vpow2.f32 %v1564_v14 }
 0x49c   :  { %v1628_v13 = vpop.eup %1627 }
 0x49d   :  { %294 = vrot.lane.b32.xlu2 %v1628_v13, %s1846_s22 }
 0x49e   :  { %v1630_v15 = vpop.eup %1629 }
 0x49f   :  { %v275_v16 = vadd.f32 1.0, %v1630_v15 }
 0x4a1   :  { %1631 = vrcp.f32 %v275_v16  ;;  %v287_v22 = vand.u32 2147483648, %v275_v16  ;;  %vm281_vm11 = vweird.f32 %v275_v16  ;;  %v285_v23 = vand.u32 2147483647, %v275_v16 }
 0x4a3   :  { %v288_v25 = vor.u32 1.1754944e-38, %v287_v22  ;;  %vm286_vm13 = vcmp.eq.f32.partialorder %v285_v23, 8.507059e+37 }
 0x4a7   :  { %v1632_v17 = vpop.eup %1631 }
 0x4a8   :  { %v277_v18 = vmul.f32 %v1632_v17, %v275_v16  ;;  %vm282_vm10 = vweird.f32 %v1632_v17 }
 0x4a9   :  { %vm283_vm12 = vmor %vm281_vm11, %vm282_vm10 }
 0x4aa   :  { %v278_v19 = vsub.f32 1.0, %v277_v18 }
 0x4ac   :  { %v279_v20 = vmul.f32 %v1632_v17, %v278_v19 }
 0x4ae   :  { %v280_v21 = vadd.f32 %v1632_v17, %v279_v20 }
 0x4b0   :  { %v284_v24 = vsel %vm283_vm12, %v1632_v17, %v280_v21 }
 0x4b1   :  { %v289_v28 = vsel %vm286_vm13, %v288_v25, %v284_v24 }
 0x4b2   :  { %v292_v38 = vmul.f32 %v289_v28, %v1934_v27 }
 0x4f7   :  { %v295_v26 = vpop.permute.xlu2 %294 }
 0x4f8   :  { %v297_v37 = vmul.f32 %v295_v26, %v289_v28  ;;  %v1568_v26 = vld [vmem:[%s2331_s0 + $0x8] sm:$0xf] }
 0x4fa   :  { %299 = vrot.lane.b32.xlu0 %v297_v37, %s1847_s23 }
 0x56c   :  { %v300_v39 = vpop.permute.xlu0 %299 }
 0x56d   :  { %v2053_v41 = vadd.f32 %v300_v39, %v292_v38 }
 0x56f   :  { %1633 = vtanh.f32 %v2053_v41 }
 0x575   :  { %v1634_v42 = vpop.eup %1633 }
 0x576   :  { %305 = vrot.lane.b32.xlu1 %v1634_v42, %s1846_s22 }
 0x5e8   :  { %v306_v43 = vpop.permute.xlu1 %305 }
 0x5e9   :  { %v308_v44 = vmul.f32 %v306_v43, %v289_v28 }
 0x5eb   :  { %310 = vrot.lane.b32.xlu0 %v308_v44, %s1847_s23 }
 0x65d   :  { %v311_v49 = vpop.permute.xlu0 %310 }
 0x65e   :  { %1565 = vmatmul.msk.f32.vlgmr.msrb.gmra.mxu1 %vm85_vm4, %v311_v49  ;;  %1567 = vmatmul.msk.f32.vlgmr.msrb.gmra.mxu3 %vm85_vm4, %v311_v49 }
 0x65f   :  { %672 = vmatpush.msrb.mxu1 %v1938_v29  ;;  %774 = vmatpush.msrb.mxu3 %v1943_v30 }
 0x661   :  { %673 = vmatpush.msrb.mxu1 %v1945_v31  ;;  %775 = vmatpush.msrb.mxu3 %v1952_v32 }
 0x663   :  { %674 = vmatpush.msrb.mxu1 %v1954_v33  ;;  %776 = vmatpush.msrb.mxu3 %v1959_v34 }
 0x665   :  { %675 = vmatpush.msrb.mxu1 %v1963_v35  ;;  %777 = vmatpush.msrb.mxu3 %v1968_v36 }
 0x6db   :  { %v331_v27 = vpop.f32.mrf.mxu1 }
 0x6dc   :  { %v332_v50 = vadd.f32 %v1996_v40, %v331_v27 }
 0x6de   :  { %v338_v51 = vmul.f32 %v332_v50, %v2039_v9  ;;  %v334_v52 = vmul.f32 0.0, %v332_v50 }
 0x6e0   :  { %v339_v53 = vsel %vm176_vm5, %v338_v51, 0.0  ;;  %v335_v54 = vsel %vm176_vm5, %v334_v52, 0.0 }
 0x6e1   :  { %340 = vadd.xlane.f32.xlu0 %v339_v53  ;;  %336 = vadd.xlane.f32.xlu1 %v335_v54  ;;  %v409_v22 = vpop.f32.mrf.mxu3 }
 0x754   :  { %v341_v55 = vpop.xlane.xlu0 %340  ;;  %v337_v56 = vpop.xlane.xlu1 %336 }
 0x755   :  { %v342_v57 = vmax.f32 %v337_v56, %v341_v55 }
 0x757   :  { %v343_v58 = vsub.f32 %v337_v56, %v342_v57  ;;  %v346_v59 = vsub.f32 %v341_v55, %v342_v57 }
 0x759   :  { %v344_v60 = vmul.f32 1.442695, %v343_v58  ;;  %v347_v61 = vmul.f32 1.442695, %v346_v59 }
 0x75b   :  { %1635 = vpow2.f32 %v344_v60 }
 0x75c   :  { %1637 = vpow2.f32 %v347_v61 }
 0x761   :  { %v1636_v62 = vpop.eup %1635 }
 0x762   :  { %v1638_v63 = vpop.eup %1637 }
 0x763   :  { %v349_v0 = vadd.f32 %v1638_v63, %v1636_v62 }
 0x765   :  { %1639 = vrcp.f32 %v349_v0  ;;  %v361_v10 = vand.u32 2147483648, %v349_v0  ;;  %v359_v12 = vand.u32 2147483647, %v349_v0  ;;  %vm355_vm15 = vweird.f32 %v349_v0 }
 0x767   :  { %v362_v14 = vor.u32 1.1754944e-38, %v361_v10  ;;  %vm360_vm1 = vcmp.eq.f32.partialorder %v359_v12, 8.507059e+37 }
 0x76b   :  { %v1640_v6 = vpop.eup %1639 }
 0x76c   :  { %v351_v7 = vmul.f32 %v1640_v6, %v349_v0  ;;  %vm356_vm14 = vweird.f32 %v1640_v6 }
 0x76d   :  { %vm357_vm0 = vmor %vm355_vm15, %vm356_vm14 }
 0x76e   :  { %v352_v8 = vsub.f32 1.0, %v351_v7 }
 0x770   :  { %v353_v11 = vmul.f32 %v1640_v6, %v352_v8 }
 0x772   :  { %v354_v13 = vadd.f32 %v1640_v6, %v353_v11 }
 0x774   :  { %v358_v15 = vsel %vm357_vm0, %v1640_v6, %v354_v13 }
 0x775   :  { %v363_v16 = vsel %vm360_vm1, %v362_v14, %v358_v15 }
 0x776   :  { %v364_v17 = vmul.f32 %v1636_v62, %v363_v16  ;;  %v366_v18 = vmul.f32 %v1638_v63, %v363_v16 }
 0x778   :  { %v365_v19 = vmul.f32 0.0, %v364_v17  ;;  %v367_v20 = vmul.f32 %v366_v18, %v2039_v9 }
 0x77a   :  { %v368_v21 = vadd.f32 %v367_v20, %v365_v19 }
 0x77c   :  { %1566 = vmatmul.msk.f32.vlgmr.msrb.gmra.mxu2 %vm85_vm4, %v368_v21 }
 0x77d   :  { %754 = vmatpush.msrb.mxu2 %v2003_v45 }
 0x77f   :  { %755 = vmatpush.msrb.mxu2 %v2008_v46 }
 0x781   :  { %756 = vmatpush.msrb.mxu2 %v2014_v47 }
 0x783   :  { %757 = vmatpush.msrb.mxu2 %v2020_v48 }
 0x7ff   :  { %v389_v23 = vpop.f32.mrf.mxu2 }
 0x800   :  { %v410_v24 = vadd.f32 %v409_v22, %v389_v23 }
 0x802   :  { %v2079_v25 = vadd.f32 %v2036_v5, %v410_v24 }
 0x804   :  { %1569 = vmatmul.msk.f32.vlgmr.msra.gmra.mxu0 %vm85_vm4, %v2079_v25 }
 0x805   :  { %800 = vmatpush.msra.mxu0 %v1909_v1 }
 0x807   :  { %801 = vmatpush.msra.mxu0 %v1911_v2 }
 0x809   :  { %802 = vmatpush.msra.mxu0 %v1914_v3 }
 0x80b   :  { %803 = vmatpush.msra.mxu0 %v1917_v4 }
 0x881   :  { %v435_v28 = vpop.f32.mrf.mxu0 }
 0x882   :  { %v438_v37 = vadd.f32 %v1568_v26, %v435_v28 }
 0x884   :  { %1641 = vtanh.f32 %v438_v37  ;;  %v1570_v39 = vmul.f32 -1.442695, %v438_v37 }
 0x886   :  { %1643 = vpow2.f32 %v1570_v39 }
 0x88a   :  { %v1642_v38 = vpop.eup %1641 }
 0x88b   :  { %461 = vrot.lane.b32.xlu2 %v1642_v38, %s1846_s22 }
 0x88c   :  { %v1644_v42 = vpop.eup %1643 }
 0x88d   :  { %v442_v43 = vadd.f32 1.0, %v1644_v42 }
 0x88f   :  { %1645 = vrcp.f32 %v442_v43  ;;  %v454_v52 = vand.u32 2147483648, %v442_v43  ;;  %vm448_vm3 = vweird.f32 %v442_v43  ;;  %v452_v53 = vand.u32 2147483647, %v442_v43 }
 0x891   :  { %v455_v55 = vor.u32 1.1754944e-38, %v454_v52  ;;  %vm453_vm7 = vcmp.eq.f32.partialorder %v452_v53, 8.507059e+37 }
 0x895   :  { %v1646_v44 = vpop.eup %1645 }
 0x896   :  { %v444_v49 = vmul.f32 %v1646_v44, %v442_v43  ;;  %vm449_vm2 = vweird.f32 %v1646_v44 }
 0x897   :  { %vm450_vm6 = vmor %vm448_vm3, %vm449_vm2 }
 0x898   :  { %v445_v27 = vsub.f32 1.0, %v444_v49 }
 0x89a   :  { %v446_v50 = vmul.f32 %v1646_v44, %v445_v27 }
 0x89c   :  { %v447_v51 = vadd.f32 %v1646_v44, %v446_v50 }
 0x89e   :  { %v451_v54 = vsel %vm450_vm6, %v1646_v44, %v447_v51 }
 0x89f   :  { %v456_v57 = vsel %vm453_vm7, %v455_v55, %v451_v54 }
 0x8a0   :  { %v459_v59 = vmul.f32 %v456_v57, %v2053_v41 }
 0x8e5   :  { %v462_v56 = vpop.permute.xlu2 %461 }
 0x8e6   :  { %v464_v58 = vmul.f32 %v462_v56, %v456_v57 }
 0x8e8   :  { %466 = vrot.lane.b32.xlu2 %v464_v58, %s1847_s23 }
 0x942   :  { %v467_v60 = vpop.permute.xlu2 %466 }
 0x943   :  { %v2093_v61 = vadd.f32 %v467_v60, %v459_v59 }
 0x945   :  { %1647 = vtanh.f32 %v2093_v61 }
 0x94b   :  { %v1648_v62 = vpop.eup %1647 }
 0x94c   :  { %472 = vrot.lane.b32.xlu2 %v1648_v62, %s1846_s22 }
 0x9a6   :  { %v473_v63 = vpop.permute.xlu2 %472 }
 0x9a7   :  { %v475_v0 = vmul.f32 %v473_v63, %v456_v57 }
 0x9a9   :  { %477 = vrot.lane.b32.xlu2 %v475_v0, %s1847_s23 }
 0xa03   :  { %v478_v6 = vpop.permute.xlu2 %477 }
 0xa04   :  { %1571 = vmatmul.msk.f32.vlgmr.msra.gmra.mxu1 %vm85_vm4, %v478_v6  ;;  %1573 = vmatmul.msk.f32.vlgmr.msra.gmra.mxu3 %vm85_vm4, %v478_v6 }
 0xa05   :  { %863 = vmatpush.msra.mxu1 %v1938_v29  ;;  %977 = vmatpush.msra.mxu3 %v1943_v30 }
 0xa07   :  { %864 = vmatpush.msra.mxu1 %v1945_v31  ;;  %978 = vmatpush.msra.mxu3 %v1952_v32 }
 0xa09   :  { %865 = vmatpush.msra.mxu1 %v1954_v33  ;;  %979 = vmatpush.msra.mxu3 %v1959_v34 }
 0xa0b   :  { %866 = vmatpush.msra.mxu1 %v1963_v35  ;;  %980 = vmatpush.msra.mxu3 %v1968_v36 }
 0xa81   :  { %v498_v41 = vpop.f32.mrf.mxu1 }
 0xa82   :  { %v499_v7 = vadd.f32 %v1996_v40, %v498_v41 }
 0xa84   :  { %v509_v8 = vmul.f32 %v499_v7, %v2079_v25  ;;  %v505_v10 = vmul.f32 %v499_v7, %v2039_v9  ;;  %v501_v11 = vmul.f32 0.0, %v499_v7 }
 0xa86   :  { %v510_v12 = vsel %vm176_vm5, %v509_v8, 0.0  ;;  %v506_v13 = vsel %vm176_vm5, %v505_v10, 0.0  ;;  %v502_v14 = vsel %vm176_vm5, %v501_v11, 0.0  ;;  %v1574_v10 = vld [vmem:[%s2331_s0 + $0xc] sm:$0xf] }
 0xa87   :  { %511 = vadd.xlane.f32.xlu0 %v510_v12  ;;  %507 = vadd.xlane.f32.xlu1 %v506_v13  ;;  %v588_v6 = vpop.f32.mrf.mxu3 }
 0xa88   :  { %503 = vadd.xlane.f32.xlu2 %v502_v14 }
 0xafa   :  { %v508_v15 = vpop.xlane.xlu1 %507  ;;  %v512_v18 = vpop.xlane.xlu0 %511 }
 0xafb   :  { %v504_v16 = vpop.xlane.xlu2 %503 }
 0xafc   :  { %v513_v17 = vmax.f32 %v504_v16, %v508_v15 }
 0xafe   :  { %v514_v19 = vmax.f32 %v513_v17, %v512_v18 }
 0xb00   :  { %v515_v20 = vsub.f32 %v504_v16, %v514_v19  ;;  %v518_v21 = vsub.f32 %v508_v15, %v514_v19  ;;  %v521_v22 = vsub.f32 %v512_v18, %v514_v19 }
 0xb02   :  { %v516_v23 = vmul.f32 1.442695, %v515_v20  ;;  %v519_v24 = vmul.f32 1.442695, %v518_v21  ;;  %v522_v26 = vmul.f32 1.442695, %v521_v22 }
 0xb04   :  { %1649 = vpow2.f32 %v516_v23 }
 0xb05   :  { %1651 = vpow2.f32 %v519_v24 }
 0xb06   :  { %1653 = vpow2.f32 %v522_v26 }
 0xb0a   :  { %v1650_v28 = vpop.eup %1649 }
 0xb0b   :  { %v1652_v37 = vpop.eup %1651 }
 0xb0c   :  { %v524_v38 = vadd.f32 %v1652_v37, %v1650_v28  ;;  %v1654_v39 = vpop.eup %1653 }
 0xb0e   :  { %v525_v42 = vadd.f32 %v1654_v39, %v524_v38 }
 0xb10   :  { %1655 = vrcp.f32 %v525_v42  ;;  %v537_v27 = vand.u32 2147483648, %v525_v42  ;;  %v535_v51 = vand.u32 2147483647, %v525_v42  ;;  %vm531_vm9 = vweird.f32 %v525_v42 }
 0xb12   :  { %v538_v53 = vor.u32 1.1754944e-38, %v537_v27  ;;  %vm536_vm11 = vcmp.eq.f32.partialorder %v535_v51, 8.507059e+37 }
 0xb16   :  { %v1656_v43 = vpop.eup %1655 }
 0xb17   :  { %v527_v44 = vmul.f32 %v1656_v43, %v525_v42  ;;  %vm532_vm8 = vweird.f32 %v1656_v43 }
 0xb18   :  { %vm533_vm10 = vmor %vm531_vm9, %vm532_vm8 }
 0xb19   :  { %v528_v49 = vsub.f32 1.0, %v527_v44 }
 0xb1b   :  { %v529_v50 = vmul.f32 %v1656_v43, %v528_v49 }
 0xb1d   :  { %v530_v52 = vadd.f32 %v1656_v43, %v529_v50 }
 0xb1f   :  { %v534_v54 = vsel %vm533_vm10, %v1656_v43, %v530_v52 }
 0xb20   :  { %v539_v55 = vsel %vm536_vm11, %v538_v53, %v534_v54 }
 0xb21   :  { %v540_v56 = vmul.f32 %v1650_v28, %v539_v55  ;;  %v542_v57 = vmul.f32 %v1652_v37, %v539_v55  ;;  %v545_v58 = vmul.f32 %v1654_v39, %v539_v55 }
 0xb23   :  { %v541_v59 = vmul.f32 0.0, %v540_v56  ;;  %v543_v60 = vmul.f32 %v542_v57, %v2039_v9  ;;  %v546_v63 = vmul.f32 %v545_v58, %v2079_v25 }
 0xb25   :  { %v544_v62 = vadd.f32 %v543_v60, %v541_v59 }
 0xb27   :  { %v547_v0 = vadd.f32 %v546_v63, %v544_v62 }
 0xb29   :  { %1572 = vmatmul.msk.f32.vlgmr.msra.gmra.mxu2 %vm85_vm4, %v547_v0 }
 0xb2a   :  { %957 = vmatpush.msra.mxu2 %v2003_v45 }
 0xb2c   :  { %958 = vmatpush.msra.mxu2 %v2008_v46 }
 0xb2e   :  { %959 = vmatpush.msra.mxu2 %v2014_v47 }
 0xb30   :  { %960 = vmatpush.msra.mxu2 %v2020_v48 }
 0xbac   :  { %v568_v41 = vpop.f32.mrf.mxu2 }
 0xbad   :  { %v589_v7 = vadd.f32 %v588_v6, %v568_v41 }
 0xbaf   :  { %v2122_v8 = vadd.f32 %v2036_v5, %v589_v7 }
 0xbb1   :  { %1575 = vmatmul.msk.f32.vlgmr.msrb.gmra.mxu0 %vm85_vm4, %v2122_v8 }
 0xbb2   :  { %1003 = vmatpush.msrb.mxu0 %v1909_v1 }
 0xbb4   :  { %1004 = vmatpush.msrb.mxu0 %v1911_v2 }
 0xbb6   :  { %1005 = vmatpush.msrb.mxu0 %v1914_v3 }
 0xbb8   :  { %1006 = vmatpush.msrb.mxu0 %v1917_v4 }
 0xc2e   :  { %v614_v11 = vpop.f32.mrf.mxu0 }
 0xc2f   :  { %v617_v12 = vadd.f32 %v1574_v10, %v614_v11 }
 0xc31   :  { %1657 = vtanh.f32 %v617_v12  ;;  %v1576_v14 = vmul.f32 -1.442695, %v617_v12 }
 0xc33   :  { %1659 = vpow2.f32 %v1576_v14 }
 0xc37   :  { %v1658_v13 = vpop.eup %1657 }
 0xc38   :  { %640 = vrot.lane.b32.xlu1 %v1658_v13, %s1846_s22 }
 0xc39   :  { %v1660_v15 = vpop.eup %1659 }
 0xc3a   :  { %v621_v16 = vadd.f32 1.0, %v1660_v15 }
 0xc3c   :  { %1661 = vrcp.f32 %v621_v16  ;;  %v633_v22 = vand.u32 2147483648, %v621_v16  ;;  %vm627_vm13 = vweird.f32 %v621_v16  ;;  %v631_v23 = vand.u32 2147483647, %v621_v16 }
 0xc3e   :  { %v634_v26 = vor.u32 1.1754944e-38, %v633_v22  ;;  %vm632_vm15 = vcmp.eq.f32.partialorder %v631_v23, 8.507059e+37 }
 0xc42   :  { %v1662_v17 = vpop.eup %1661 }
 0xc43   :  { %v623_v18 = vmul.f32 %v1662_v17, %v621_v16  ;;  %vm628_vm12 = vweird.f32 %v1662_v17 }
 0xc44   :  { %vm629_vm14 = vmor %vm627_vm13, %vm628_vm12 }
 0xc45   :  { %v624_v19 = vsub.f32 1.0, %v623_v18 }
 0xc47   :  { %v625_v20 = vmul.f32 %v1662_v17, %v624_v19 }
 0xc49   :  { %v626_v21 = vadd.f32 %v1662_v17, %v625_v20 }
 0xc4b   :  { %v630_v24 = vsel %vm629_vm14, %v1662_v17, %v626_v21 }
 0xc4c   :  { %v635_v37 = vsel %vm632_vm15, %v634_v26, %v630_v24 }
 0xc4d   :  { %v638_v39 = vmul.f32 %v635_v37, %v2093_v61 }
 0xcaa   :  { %v641_v28 = vpop.permute.xlu1 %640 }
 0xcab   :  { %v643_v38 = vmul.f32 %v641_v28, %v635_v37 }
 0xcad   :  { %645 = vrot.lane.b32.xlu0 %v643_v38, %s1847_s23 }
 0xd1f   :  { %v646_v42 = vpop.permute.xlu0 %645 }
 0xd20   :  { %v2136_v43 = vadd.f32 %v646_v42, %v638_v39 }
 0xd22   :  { %1663 = vtanh.f32 %v2136_v43 }
 0xd28   :  { %v1664_v44 = vpop.eup %1663 }
 0xd29   :  { %651 = vrot.lane.b32.xlu1 %v1664_v44, %s1846_s22 }
 0xd9b   :  { %v652_v49 = vpop.permute.xlu1 %651 }
 0xd9c   :  { %v654_v27 = vmul.f32 %v652_v49, %v635_v37 }
 0xd9e   :  { %656 = vrot.lane.b32.xlu0 %v654_v27, %s1847_s23 }
 0xe10   :  { %v657_v50 = vpop.permute.xlu0 %656 }
 0xe11   :  { %1577 = vmatmul.msk.f32.vlgmr.msrb.gmra.mxu1 %vm85_vm4, %v657_v50  ;;  %1579 = vmatmul.msk.f32.vlgmr.msrb.gmra.mxu3 %vm85_vm4, %v657_v50 }
 0xe12   :  { %1066 = vmatpush.msrb.mxu1 %v1938_v29  ;;  %1192 = vmatpush.msrb.mxu3 %v1943_v30 }
 0xe14   :  { %1067 = vmatpush.msrb.mxu1 %v1945_v31  ;;  %1193 = vmatpush.msrb.mxu3 %v1952_v32 }
 0xe16   :  { %1068 = vmatpush.msrb.mxu1 %v1954_v33  ;;  %1194 = vmatpush.msrb.mxu3 %v1959_v34 }
 0xe18   :  { %1069 = vmatpush.msrb.mxu1 %v1963_v35  ;;  %1195 = vmatpush.msrb.mxu3 %v1968_v36 }
 0xe8e   :  { %v677_v61 = vpop.f32.mrf.mxu1 }
 0xe8f   :  { %v678_v51 = vadd.f32 %v1996_v40, %v677_v61 }
 0xe91   :  { %v688_v52 = vmul.f32 %v678_v51, %v2079_v25  ;;  %v684_v53 = vmul.f32 %v678_v51, %v2039_v9  ;;  %v680_v54 = vmul.f32 0.0, %v678_v51  ;;  %v692_v58 = vmul.f32 %v678_v51, %v2122_v8 }
 0xe93   :  { %v689_v55 = vsel %vm176_vm5, %v688_v52, 0.0  ;;  %v685_v56 = vsel %vm176_vm5, %v684_v53, 0.0  ;;  %v681_v57 = vsel %vm176_vm5, %v680_v54, 0.0  ;;  %v693_v59 = vsel %vm176_vm5, %v692_v58, 0.0 }
 0xe94   :  { %690 = vadd.xlane.f32.xlu0 %v689_v55  ;;  %686 = vadd.xlane.f32.xlu1 %v685_v56 }
 0xe95   :  { %682 = vadd.xlane.f32.xlu2 %v681_v57 }
 0xe9d   :  { %694 = vadd.xlane.f32.xlu2 %v693_v59 }
 0xf07   :  { %v687_v60 = vpop.xlane.xlu1 %686  ;;  %v691_v0 = vpop.xlane.xlu0 %690 }
 0xf08   :  { %v683_v62 = vpop.xlane.xlu2 %682 }
 0xf09   :  { %v696_v63 = vmax.f32 %v683_v62, %v687_v60 }
 0xf0b   :  { %v697_v6 = vmax.f32 %v696_v63, %v691_v0 }
 0xf10   :  { %v695_v41 = vpop.xlane.xlu2 %694 }
 0xf11   :  { %v698_v7 = vmax.f32 %v697_v6, %v695_v41 }
 0xf13   :  { %v699_v10 = vsub.f32 %v683_v62, %v698_v7  ;;  %v702_v11 = vsub.f32 %v687_v60, %v698_v7  ;;  %v705_v12 = vsub.f32 %v691_v0, %v698_v7  ;;  %v708_v13 = vsub.f32 %v695_v41, %v698_v7  ;;  %v779_v62 = vpop.f32.mrf.mxu3 }
 0xf15   :  { %v700_v14 = vmul.f32 1.442695, %v699_v10  ;;  %v703_v15 = vmul.f32 1.442695, %v702_v11  ;;  %v706_v16 = vmul.f32 1.442695, %v705_v12 }
 0xf16   :  { %v709_v17 = vmul.f32 1.442695, %v708_v13 }
 0xf17   :  { %1665 = vpow2.f32 %v700_v14 }
 0xf18   :  { %1667 = vpow2.f32 %v703_v15 }
 0xf19   :  { %1669 = vpow2.f32 %v706_v16 }
 0xf1a   :  { %1671 = vpow2.f32 %v709_v17 }
 0xf1d   :  { %v1666_v18 = vpop.eup %1665 }
 0xf1e   :  { %v1668_v19 = vpop.eup %1667 }
 0xf1f   :  { %v711_v20 = vadd.f32 %v1668_v19, %v1666_v18  ;;  %v1670_v21 = vpop.eup %1669 }
 0xf20   :  { %v1672_v23 = vpop.eup %1671 }
 0xf21   :  { %v712_v22 = vadd.f32 %v1670_v21, %v711_v20 }
 0xf23   :  { %v713_v24 = vadd.f32 %v1672_v23, %v712_v22 }
 0xf25   :  { %1673 = vrcp.f32 %v713_v24  ;;  %v725_v38 = vand.u32 2147483648, %v713_v24  ;;  %v723_v42 = vand.u32 2147483647, %v713_v24  ;;  %vm719_vm1 = vweird.f32 %v713_v24 }
 0xf27   :  { %v726_v49 = vor.u32 1.1754944e-38, %v725_v38  ;;  %vm724_vm3 = vcmp.eq.f32.partialorder %v723_v42, 8.507059e+37 }
 0xf2b   :  { %v1674_v26 = vpop.eup %1673 }
 0xf2c   :  { %v715_v28 = vmul.f32 %v1674_v26, %v713_v24  ;;  %vm720_vm0 = vweird.f32 %v1674_v26 }
 0xf2d   :  { %vm721_vm2 = vmor %vm719_vm1, %vm720_vm0 }
 0xf2e   :  { %v716_v37 = vsub.f32 1.0, %v715_v28 }
 0xf30   :  { %v717_v39 = vmul.f32 %v1674_v26, %v716_v37 }
 0xf32   :  { %v718_v44 = vadd.f32 %v1674_v26, %v717_v39 }
 0xf34   :  { %v722_v27 = vsel %vm721_vm2, %v1674_v26, %v718_v44 }
 0xf35   :  { %v727_v50 = vsel %vm724_vm3, %v726_v49, %v722_v27 }
 0xf36   :  { %v728_v61 = vmul.f32 %v1666_v18, %v727_v50  ;;  %v730_v51 = vmul.f32 %v1668_v19, %v727_v50  ;;  %v733_v52 = vmul.f32 %v1670_v21, %v727_v50  ;;  %v736_v53 = vmul.f32 %v1672_v23, %v727_v50 }
 0xf38   :  { %v729_v54 = vmul.f32 0.0, %v728_v61  ;;  %v731_v55 = vmul.f32 %v730_v51, %v2039_v9  ;;  %v734_v57 = vmul.f32 %v733_v52, %v2079_v25  ;;  %v737_v58 = vmul.f32 %v736_v53, %v2122_v8 }
 0xf3a   :  { %v732_v56 = vadd.f32 %v731_v55, %v729_v54 }
 0xf3c   :  { %v735_v59 = vadd.f32 %v734_v57, %v732_v56 }
 0xf3e   :  { %v738_v60 = vadd.f32 %v737_v58, %v735_v59 }
 0xf40   :  { %1578 = vmatmul.msk.f32.vlgmr.msrb.gmra.mxu2 %vm85_vm4, %v738_v60 }
 0xf41   :  { %1172 = vmatpush.msrb.mxu2 %v2003_v45  ;;  %v1580_v45 = vld [vmem:[%s2331_s0 + $0x10] sm:$0xf] }
 0xf43   :  { %1173 = vmatpush.msrb.mxu2 %v2008_v46 }
 0xf45   :  { %1174 = vmatpush.msrb.mxu2 %v2014_v47 }
 0xf47   :  { %1175 = vmatpush.msrb.mxu2 %v2020_v48 }
 0xfc3   :  { %v759_v63 = vpop.f32.mrf.mxu2 }
 0xfc4   :  { %v780_v0 = vadd.f32 %v779_v62, %v759_v63 }
 0xfc6   :  { %v2168_v6 = vadd.f32 %v2036_v5, %v780_v0 }
 0xfc8   :  { %1581 = vmatmul.msk.f32.vlgmr.msra.gmra.mxu0 %vm85_vm4, %v2168_v6 }
 0xfc9   :  { %1218 = vmatpush.msra.mxu0 %v1909_v1 }
 0xfcb   :  { %1219 = vmatpush.msra.mxu0 %v1911_v2 }
 0xfcd   :  { %1220 = vmatpush.msra.mxu0 %v1914_v3 }
 0xfcf   :  { %1221 = vmatpush.msra.mxu0 %v1917_v4 }
0x1045   :  { %v805_v46 = vpop.f32.mrf.mxu0 }
0x1046   :  { %v808_v47 = vadd.f32 %v1580_v45, %v805_v46 }
0x1048   :  { %1675 = vtanh.f32 %v808_v47  ;;  %v1582_v41 = vmul.f32 -1.442695, %v808_v47 }
0x104a   :  { %1677 = vpow2.f32 %v1582_v41 }
0x104e   :  { %v1676_v48 = vpop.eup %1675 }
0x104f   :  { %831 = vrot.lane.b32.xlu2 %v1676_v48, %s1846_s22 }
0x1050   :  { %v1678_v7 = vpop.eup %1677 }
0x1051   :  { %v812_v1 = vadd.f32 1.0, %v1678_v7 }
0x1053   :  { %1679 = vrcp.f32 %v812_v1  ;;  %v824_v12 = vand.u32 2147483648, %v812_v1  ;;  %vm818_vm7 = vweird.f32 %v812_v1  ;;  %v822_v13 = vand.u32 2147483647, %v812_v1 }
0x1055   :  { %v825_v15 = vor.u32 1.1754944e-38, %v824_v12  ;;  %vm823_vm9 = vcmp.eq.f32.partialorder %v822_v13, 8.507059e+37 }
0x1059   :  { %v1680_v2 = vpop.eup %1679 }
0x105a   :  { %v814_v10 = vmul.f32 %v1680_v2, %v812_v1  ;;  %vm819_vm6 = vweird.f32 %v1680_v2 }
0x105b   :  { %vm820_vm8 = vmor %vm818_vm7, %vm819_vm6 }
0x105c   :  { %v815_v3 = vsub.f32 1.0, %v814_v10 }
0x105e   :  { %v816_v11 = vmul.f32 %v1680_v2, %v815_v3 }
0x1060   :  { %v817_v4 = vadd.f32 %v1680_v2, %v816_v11 }
0x1062   :  { %v821_v14 = vsel %vm820_vm8, %v1680_v2, %v817_v4 }
0x1063   :  { %v826_v17 = vsel %vm823_vm9, %v825_v15, %v821_v14 }
0x1064   :  { %v829_v19 = vmul.f32 %v826_v17, %v2136_v43 }
0x10a9   :  { %v832_v16 = vpop.permute.xlu2 %831 }
0x10aa   :  { %v834_v18 = vmul.f32 %v832_v16, %v826_v17 }
0x10ac   :  { %836 = vrot.lane.b32.xlu2 %v834_v18, %s1847_s23 }
0x1106   :  { %v837_v20 = vpop.permute.xlu2 %836 }
0x1107   :  { %v2182_v21 = vadd.f32 %v837_v20, %v829_v19 }
0x1109   :  { %1681 = vtanh.f32 %v2182_v21 }
0x110f   :  { %v1682_v22 = vpop.eup %1681 }
0x1110   :  { %842 = vrot.lane.b32.xlu1 %v1682_v22, %s1846_s22 }
0x1182   :  { %v843_v23 = vpop.permute.xlu1 %842 }
0x1183   :  { %v845_v24 = vmul.f32 %v843_v23, %v826_v17 }
0x1185   :  { %847 = vrot.lane.b32.xlu0 %v845_v24, %s1847_s23 }
0x11f7   :  { %v848_v26 = vpop.permute.xlu0 %847 }
0x11f8   :  { %1583 = vmatmul.msk.f32.vlgmr.msra.gmra.mxu1 %vm85_vm4, %v848_v26  ;;  %1585 = vmatmul.msk.f32.vlgmr.msra.gmra.mxu3 %vm85_vm4, %v848_v26 }
0x11f9   :  { %1281 = vmatpush.msra.mxu1 %v1938_v29  ;;  %1419 = vmatpush.msra.mxu3 %v1943_v30 }
0x11fb   :  { %1282 = vmatpush.msra.mxu1 %v1945_v31  ;;  %1420 = vmatpush.msra.mxu3 %v1952_v32 }
0x11fd   :  { %1283 = vmatpush.msra.mxu1 %v1954_v33  ;;  %1421 = vmatpush.msra.mxu3 %v1959_v34 }
0x11ff   :  { %1284 = vmatpush.msra.mxu1 %v1963_v35  ;;  %1422 = vmatpush.msra.mxu3 %v1968_v36 }
0x1275   :  { %v868_v43 = vpop.f32.mrf.mxu1 }
0x1276   :  { %v869_v28 = vadd.f32 %v1996_v40, %v868_v43 }
0x1278   :  { %v879_v37 = vmul.f32 %v869_v28, %v2079_v25  ;;  %v875_v29 = vmul.f32 %v869_v28, %v2039_v9  ;;  %v871_v30 = vmul.f32 0.0, %v869_v28  ;;  %v883_v34 = vmul.f32 %v869_v28, %v2122_v8 }
0x1279   :  { %v887_v36 = vmul.f32 %v869_v28, %v2168_v6 }
0x127a   :  { %v880_v31 = vsel %vm176_vm5, %v879_v37, 0.0  ;;  %v876_v32 = vsel %vm176_vm5, %v875_v29, 0.0  ;;  %v872_v33 = vsel %vm176_vm5, %v871_v30, 0.0  ;;  %v884_v35 = vsel %vm176_vm5, %v883_v34, 0.0  ;;  %v1755_v34 = vld [vmem:[%s2335_s4 + $0x28] sm:$0xff] }
0x127b   :  { %881 = vadd.xlane.f32.xlu1 %v880_v31  ;;  %877 = vadd.xlane.f32.xlu0 %v876_v32  ;;  %v888_v40 = vsel %vm176_vm5, %v887_v36, 0.0  ;;  %v1753_v32 = vld [vmem:[%s2335_s4 + $0x38] sm:$0xff]  ;;  %v982_v36 = vpop.f32.mrf.mxu3 }
0x127c   :  { %873 = vadd.xlane.f32.xlu2 %v872_v33  ;;  %v1754_v33 = vld [vmem:[%s2335_s4 + $0x30] sm:$0xff] }
0x1284   :  { %885 = vadd.xlane.f32.xlu2 %v884_v35  ;;  %v1756_v35 = vld [vmem:[%s2335_s4 + $0x20] sm:$0xff] }
0x128c   :  { %889 = vadd.xlane.f32.xlu2 %v888_v40 }
0x12ee   :  { %v878_v39 = vpop.xlane.xlu0 %877  ;;  %v882_v49 = vpop.xlane.xlu1 %881 }
0x12ef   :  { %v874_v38 = vpop.xlane.xlu2 %873 }
0x12f0   :  { %v891_v44 = vmax.f32 %v874_v38, %v878_v39 }
0x12f2   :  { %v892_v27 = vmax.f32 %v891_v44, %v882_v49  ;;  %v1758_v44 = vld [vmem:[#allocation3 + $0x10] sm:$0xff] }
0x12f7   :  { %v886_v42 = vpop.xlane.xlu2 %885 }
0x12f8   :  { %v893_v50 = vmax.f32 %v892_v27, %v886_v42  ;;  %v1760_v27 = vld [vmem:[#allocation3] sm:$0xff] }
0x12ff   :  { %v890_v61 = vpop.xlane.xlu2 %889 }
0x1300   :  { %v894_v51 = vmax.f32 %v893_v50, %v890_v61  ;;  %v1586_v50 = vld [vmem:[%s2331_s0 + $0x14] sm:$0xf] }
0x1302   :  { %v895_v52 = vsub.f32 %v874_v38, %v894_v51  ;;  %v898_v53 = vsub.f32 %v878_v39, %v894_v51  ;;  %v901_v54 = vsub.f32 %v882_v49, %v894_v51  ;;  %v904_v55 = vsub.f32 %v886_v42, %v894_v51  ;;  %v1757_v42 = vld [vmem:[#allocation3 + $0x18] sm:$0xff]  ;;  %v1759_v49 = vld [vmem:[#allocation3 + $0x8] sm:$0xff] }
0x1303   :  { %v907_v59 = vsub.f32 %v890_v61, %v894_v51 }
0x1304   :  { %v896_v56 = vmul.f32 1.442695, %v895_v52  ;;  %v899_v57 = vmul.f32 1.442695, %v898_v53  ;;  %v902_v58 = vmul.f32 1.442695, %v901_v54 }
0x1305   :  { %v905_v60 = vmul.f32 1.442695, %v904_v55  ;;  %v908_v62 = vmul.f32 1.442695, %v907_v59 }
0x1306   :  { %1683 = vpow2.f32 %v896_v56 }
0x1307   :  { %1685 = vpow2.f32 %v899_v57 }
0x1308   :  { %1687 = vpow2.f32 %v902_v58 }
0x1309   :  { %1689 = vpow2.f32 %v905_v60 }
0x130a   :  { %1691 = vpow2.f32 %v908_v62 }
0x130c   :  { %v1684_v63 = vpop.eup %1683 }
0x130d   :  { %v1686_v0 = vpop.eup %1685 }
0x130e   :  { %v910_v45 = vadd.f32 %v1686_v0, %v1684_v63  ;;  %v1688_v46 = vpop.eup %1687 }
0x130f   :  { %v1690_v48 = vpop.eup %1689 }
0x1310   :  { %v911_v47 = vadd.f32 %v1688_v46, %v910_v45  ;;  %v1692_v7 = vpop.eup %1691 }
0x1312   :  { %v912_v41 = vadd.f32 %v1690_v48, %v911_v47 }
0x1314   :  { %v913_v1 = vadd.f32 %v1692_v7, %v912_v41 }
0x1316   :  { %1693 = vrcp.f32 %v913_v1  ;;  %v925_v11 = vand.u32 2147483648, %v913_v1  ;;  %v923_v12 = vand.u32 2147483647, %v913_v1  ;;  %vm919_vm11 = vweird.f32 %v913_v1 }
0x1318   :  { %v926_v14 = vor.u32 1.1754944e-38, %v925_v11  ;;  %vm924_vm13 = vcmp.eq.f32.partialorder %v923_v12, 8.507059e+37 }
0x131c   :  { %v1694_v2 = vpop.eup %1693 }
0x131d   :  { %v915_v10 = vmul.f32 %v1694_v2, %v913_v1  ;;  %vm920_vm10 = vweird.f32 %v1694_v2 }
0x131e   :  { %vm921_vm12 = vmor %vm919_vm11, %vm920_vm10 }
0x131f   :  { %v916_v3 = vsub.f32 1.0, %v915_v10 }
0x1321   :  { %v917_v4 = vmul.f32 %v1694_v2, %v916_v3 }
0x1323   :  { %v918_v13 = vadd.f32 %v1694_v2, %v917_v4 }
0x1325   :  { %v922_v15 = vsel %vm921_vm12, %v1694_v2, %v918_v13 }
0x1326   :  { %v927_v16 = vsel %vm924_vm13, %v926_v14, %v922_v15 }
0x1327   :  { %v928_v17 = vmul.f32 %v1684_v63, %v927_v16  ;;  %v930_v18 = vmul.f32 %v1686_v0, %v927_v16  ;;  %v933_v19 = vmul.f32 %v1688_v46, %v927_v16  ;;  %v936_v23 = vmul.f32 %v1690_v48, %v927_v16 }
0x1328   :  { %v939_v24 = vmul.f32 %v1692_v7, %v927_v16 }
0x1329   :  { %v929_v20 = vmul.f32 0.0, %v928_v17  ;;  %v931_v22 = vmul.f32 %v930_v18, %v2039_v9  ;;  %v934_v43 = vmul.f32 %v933_v19, %v2079_v25  ;;  %v937_v37 = vmul.f32 %v936_v23, %v2122_v8 }
0x132a   :  { %v940_v29 = vmul.f32 %v939_v24, %v2168_v6 }
0x132b   :  { %v932_v26 = vadd.f32 %v931_v22, %v929_v20 }
0x132d   :  { %v935_v28 = vadd.f32 %v934_v43, %v932_v26 }
0x132f   :  { %v938_v30 = vadd.f32 %v937_v37, %v935_v28 }
0x1331   :  { %v941_v31 = vadd.f32 %v940_v29, %v938_v30 }
0x1333   :  { %1584 = vmatmul.msk.f32.vlgmr.msra.gmra.mxu2 %vm85_vm4, %v941_v31 }
0x1334   :  { %1399 = vmatpush.msra.mxu2 %v1753_v32 }
0x1336   :  { %1400 = vmatpush.msra.mxu2 %v1754_v33 }
0x1338   :  { %1401 = vmatpush.msra.mxu2 %v1755_v34 }
0x133a   :  { %1402 = vmatpush.msra.mxu2 %v1756_v35 }
0x13b6   :  { %v962_v40 = vpop.f32.mrf.mxu2 }
0x13b7   :  { %v983_v38 = vadd.f32 %v982_v36, %v962_v40 }
0x13b9   :  { %v2225_v39 = vadd.f32 %v2036_v5, %v983_v38 }
0x13bb   :  { %1587 = vmatmul.msk.f32.vlgmr.msrb.gmra.mxu0 %vm85_vm4, %v2225_v39 }
0x13bc   :  { %1445 = vmatpush.msrb.mxu0 %v1757_v42 }
0x13be   :  { %1446 = vmatpush.msrb.mxu0 %v1758_v44 }
0x13c0   :  { %1447 = vmatpush.msrb.mxu0 %v1759_v49 }
0x13c2   :  { %1448 = vmatpush.msrb.mxu0 %v1760_v27 }
0x1438   :  { %v1008_v61 = vpop.f32.mrf.mxu0 }
0x1439   :  { %v1011_v51 = vadd.f32 %v1586_v50, %v1008_v61 }
0x143b   :  { %1695 = vtanh.f32 %v1011_v51  ;;  %v1588_v52 = vmul.f32 -1.442695, %v1011_v51 }
0x143d   :  { %1697 = vpow2.f32 %v1588_v52 }
0x1441   :  { %v1696_v5 = vpop.eup %1695 }
0x1442   :  { %1034 = vrot.lane.b32.xlu2 %v1696_v5, %s1846_s22 }
0x1443   :  { %v1698_v53 = vpop.eup %1697 }
0x1444   :  { %v1015_v54 = vadd.f32 1.0, %v1698_v53 }
0x1446   :  { %1699 = vrcp.f32 %v1015_v54  ;;  %v1027_v60 = vand.u32 2147483648, %v1015_v54  ;;  %vm1021_vm15 = vweird.f32 %v1015_v54  ;;  %v1025_v62 = vand.u32 2147483647, %v1015_v54 }
0x1448   :  { %v1028_v0 = vor.u32 1.1754944e-38, %v1027_v60  ;;  %vm1026_vm1 = vcmp.eq.f32.partialorder %v1025_v62, 8.507059e+37 }
0x144c   :  { %v1700_v55 = vpop.eup %1699 }
0x144d   :  { %v1017_v56 = vmul.f32 %v1700_v55, %v1015_v54  ;;  %vm1022_vm14 = vweird.f32 %v1700_v55 }
0x144e   :  { %vm1023_vm0 = vmor %vm1021_vm15, %vm1022_vm14 }
0x144f   :  { %v1018_v57 = vsub.f32 1.0, %v1017_v56 }
0x1451   :  { %v1019_v58 = vmul.f32 %v1700_v55, %v1018_v57 }
0x1453   :  { %v1020_v59 = vadd.f32 %v1700_v55, %v1019_v58 }
0x1455   :  { %v1024_v63 = vsel %vm1023_vm0, %v1700_v55, %v1020_v59 }
0x1456   :  { %v1029_v46 = vsel %vm1026_vm1, %v1028_v0, %v1024_v63 }
0x1457   :  { %v1032_v48 = vmul.f32 %v1029_v46, %v2182_v21  ;;  %v2245_v21 = vld [vmem:[%s2334_s3] ss:$0 sm:$0xff] }
0x149c   :  { %v1035_v45 = vpop.permute.xlu2 %1034 }
0x149d   :  { %v1037_v47 = vmul.f32 %v1035_v45, %v1029_v46 }
0x149f   :  { %1039 = vrot.lane.b32.xlu0 %v1037_v47, %s1847_s23 }
0x1511   :  { %v1040_v41 = vpop.permute.xlu0 %1039 }
0x1512   :  { %v2235_v7 = vadd.f32 %v1040_v41, %v1032_v48 }
0x1514   :  { %1701 = vtanh.f32 %v2235_v7 }
0x151a   :  { %v1702_v1 = vpop.eup %1701 }
0x151b   :  { %1045 = vrot.lane.b32.xlu1 %v1702_v1, %s1846_s22 }
0x158d   :  { %v1046_v2 = vpop.permute.xlu1 %1045 }
0x158e   :  { %v1048_v10 = vmul.f32 %v1046_v2, %v1029_v46 }
0x1590   :  { %1050 = vrot.lane.b32.xlu0 %v1048_v10, %s1847_s23 }
0x1602   :  { %v1051_v3 = vpop.permute.xlu0 %1050 }
0x1603   :  { %1589 = vmatmul.msk.f32.vlgmr.msrb.gmra.mxu1 %vm85_vm4, %v1051_v3  ;;  %1591 = vmatmul.msk.f32.vlgmr.msrb.gmra.mxu3 %vm85_vm4, %v1051_v3 }
0x1680   :  { %v1071_v11 = vpop.f32.mrf.mxu1 }
0x1681   :  { %v1072_v4 = vadd.f32 %v2245_v21, %v1071_v11 }
0x1683   :  { %v1082_v12 = vmul.f32 %v1072_v4, %v2079_v25  ;;  %v1078_v13 = vmul.f32 %v1072_v4, %v2039_v9  ;;  %v1074_v14 = vmul.f32 0.0, %v1072_v4  ;;  %v1090_v18 = vmul.f32 %v1072_v4, %v2168_v6 }
0x1684   :  { %v1086_v19 = vmul.f32 %v1072_v4, %v2122_v8  ;;  %v1094_v23 = vmul.f32 %v1072_v4, %v2225_v39 }
0x1685   :  { %v1083_v15 = vsel %vm176_vm5, %v1082_v12, 0.0  ;;  %v1079_v16 = vsel %vm176_vm5, %v1078_v13, 0.0  ;;  %v1075_v17 = vsel %vm176_vm5, %v1074_v14, 0.0  ;;  %v1091_v20 = vsel %vm176_vm5, %v1090_v18, 0.0 }
0x1686   :  { %1084 = vadd.xlane.f32.xlu0 %v1083_v15  ;;  %1080 = vadd.xlane.f32.xlu1 %v1079_v16  ;;  %v1087_v22 = vsel %vm176_vm5, %v1086_v19, 0.0  ;;  %v1095_v24 = vsel %vm176_vm5, %v1094_v23, 0.0 }
0x1687   :  { %1076 = vadd.xlane.f32.xlu2 %v1075_v17 }
0x168e   :  { %1092 = vadd.xlane.f32.xlu1 %v1091_v20 }
0x168f   :  { %1088 = vadd.xlane.f32.xlu2 %v1087_v22 }
0x1697   :  { %1096 = vadd.xlane.f32.xlu2 %v1095_v24 }
0x16f9   :  { %v1081_v43 = vpop.xlane.xlu1 %1080  ;;  %v1085_v37 = vpop.xlane.xlu0 %1084 }
0x16fa   :  { %v1077_v26 = vpop.xlane.xlu2 %1076 }
0x16fb   :  { %v1098_v28 = vmax.f32 %v1077_v26, %v1081_v43 }
0x16fd   :  { %v1099_v30 = vmax.f32 %v1098_v28, %v1085_v37 }
0x1701   :  { %v1093_v32 = vpop.xlane.xlu1 %1092 }
0x1702   :  { %v1089_v29 = vpop.xlane.xlu2 %1088 }
0x1703   :  { %v1100_v31 = vmax.f32 %v1099_v30, %v1089_v29 }
0x1705   :  { %v1101_v33 = vmax.f32 %v1100_v31, %v1093_v32 }
0x170a   :  { %v1097_v34 = vpop.xlane.xlu2 %1096 }
0x170b   :  { %v1102_v35 = vmax.f32 %v1101_v33, %v1097_v34 }
0x170d   :  { %v1103_v36 = vsub.f32 %v1077_v26, %v1102_v35  ;;  %v1106_v40 = vsub.f32 %v1081_v43, %v1102_v35  ;;  %v1109_v38 = vsub.f32 %v1085_v37, %v1102_v35  ;;  %v1112_v42 = vsub.f32 %v1089_v29, %v1102_v35  ;;  %v1197_v29 = vpop.f32.mrf.mxu3 }
0x170e   :  { %v1115_v50 = vsub.f32 %v1093_v32, %v1102_v35  ;;  %v1118_v51 = vsub.f32 %v1097_v34, %v1102_v35  ;;  %v2268_v32 = vld [vmem:[%s2336_s5] ss:$0 sm:$0xff]  ;;  %v1592_v34 = vld [vmem:[%s2331_s0 + $0x18] sm:$0xf] }
0x170f   :  { %v1104_v44 = vmul.f32 1.442695, %v1103_v36  ;;  %v1107_v49 = vmul.f32 1.442695, %v1106_v40  ;;  %v1110_v27 = vmul.f32 1.442695, %v1109_v38 }
0x1710   :  { %v1113_v61 = vmul.f32 1.442695, %v1112_v42  ;;  %v1116_v5 = vmul.f32 1.442695, %v1115_v50  ;;  %v1119_v52 = vmul.f32 1.442695, %v1118_v51 }
0x1711   :  { %1703 = vpow2.f32 %v1104_v44 }
0x1712   :  { %1705 = vpow2.f32 %v1107_v49 }
0x1713   :  { %1707 = vpow2.f32 %v1110_v27 }
0x1714   :  { %1709 = vpow2.f32 %v1113_v61 }
0x1715   :  { %1711 = vpow2.f32 %v1116_v5 }
0x1716   :  { %1713 = vpow2.f32 %v1119_v52 }
0x1717   :  { %v1704_v53 = vpop.eup %1703 }
0x1718   :  { %v1706_v54 = vpop.eup %1705 }
0x1719   :  { %v1121_v55 = vadd.f32 %v1706_v54, %v1704_v53  ;;  %v1708_v56 = vpop.eup %1707 }
0x171a   :  { %v1710_v58 = vpop.eup %1709 }
0x171b   :  { %v1122_v57 = vadd.f32 %v1708_v56, %v1121_v55  ;;  %v1712_v60 = vpop.eup %1711 }
0x171c   :  { %v1714_v63 = vpop.eup %1713 }
0x171d   :  { %v1123_v59 = vadd.f32 %v1710_v58, %v1122_v57 }
0x171f   :  { %v1124_v62 = vadd.f32 %v1712_v60, %v1123_v59 }
0x1721   :  { %v1125_v0 = vadd.f32 %v1714_v63, %v1124_v62 }
0x1723   :  { %1715 = vrcp.f32 %v1125_v0  ;;  %v1137_v48 = vand.u32 2147483648, %v1125_v0  ;;  %v1135_v1 = vand.u32 2147483647, %v1125_v0  ;;  %vm1131_vm3 = vweird.f32 %v1125_v0 }
0x1725   :  { %v1138_v10 = vor.u32 1.1754944e-38, %v1137_v48  ;;  %vm1136_vm7 = vcmp.eq.f32.partialorder %v1135_v1, 8.507059e+37 }
0x1729   :  { %v1716_v45 = vpop.eup %1715 }
0x172a   :  { %v1127_v46 = vmul.f32 %v1716_v45, %v1125_v0  ;;  %vm1132_vm2 = vweird.f32 %v1716_v45 }
0x172b   :  { %vm1133_vm6 = vmor %vm1131_vm3, %vm1132_vm2 }
0x172c   :  { %v1128_v47 = vsub.f32 1.0, %v1127_v46 }
0x172e   :  { %v1129_v41 = vmul.f32 %v1716_v45, %v1128_v47 }
0x1730   :  { %v1130_v2 = vadd.f32 %v1716_v45, %v1129_v41 }
0x1732   :  { %v1134_v3 = vsel %vm1133_vm6, %v1716_v45, %v1130_v2  ;;  %vm1529_vm6 = vcmask 3072  }
0x1733   :  { %v1139_v11 = vsel %vm1136_vm7, %v1138_v10, %v1134_v3 }
0x1734   :  { %v1140_v4 = vmul.f32 %v1704_v53, %v1139_v11  ;;  %v1142_v12 = vmul.f32 %v1706_v54, %v1139_v11  ;;  %v1145_v13 = vmul.f32 %v1708_v56, %v1139_v11  ;;  %v1148_v16 = vmul.f32 %v1710_v58, %v1139_v11 }
0x1735   :  { %v1151_v19 = vmul.f32 %v1712_v60, %v1139_v11  ;;  %v1154_v20 = vmul.f32 %v1714_v63, %v1139_v11 }
0x1736   :  { %v1141_v14 = vmul.f32 0.0, %v1140_v4  ;;  %v1143_v15 = vmul.f32 %v1142_v12, %v2039_v9  ;;  %v1146_v18 = vmul.f32 %v1145_v13, %v2079_v25  ;;  %v1149_v23 = vmul.f32 %v1148_v16, %v2122_v8 }
0x1737   :  { %v1152_v26 = vmul.f32 %v1151_v19, %v2168_v6  ;;  %v1155_v43 = vmul.f32 %v1154_v20, %v2225_v39 }
0x1738   :  { %v1144_v17 = vadd.f32 %v1143_v15, %v1141_v14 }
0x173a   :  { %v1147_v22 = vadd.f32 %v1146_v18, %v1144_v17 }
0x173c   :  { %v1150_v24 = vadd.f32 %v1149_v23, %v1147_v22 }
0x173e   :  { %v1153_v28 = vadd.f32 %v1152_v26, %v1150_v24 }
0x1740   :  { %v1156_v37 = vadd.f32 %v1155_v43, %v1153_v28 }
0x1742   :  { %1590 = vmatmul.msk.f32.vlgmr.msrb.gmra.mxu2 %vm85_vm4, %v1156_v37 }
0x17c5   :  { %v1177_v30 = vpop.f32.mrf.mxu2 }
0x17c6   :  { %v1198_v31 = vadd.f32 %v1197_v29, %v1177_v30 }
0x17c8   :  { %v2271_v33 = vadd.f32 %v2268_v32, %v1198_v31 }
0x17ca   :  { %1593 = vmatmul.msk.f32.vlgmr.msra.gmra.mxu0 %vm85_vm4, %v2271_v33 }
0x1847   :  { %v1223_v35 = vpop.f32.mrf.mxu0 }
0x1848   :  { %v1226_v36 = vadd.f32 %v1592_v34, %v1223_v35 }
0x184a   :  { %1717 = vtanh.f32 %v1226_v36  ;;  %v1594_v38 = vmul.f32 -1.442695, %v1226_v36 }
0x184c   :  { %1719 = vpow2.f32 %v1594_v38 }
0x1850   :  { %v1718_v40 = vpop.eup %1717 }
0x1851   :  { %1249 = vrot.lane.b32.xlu0 %v1718_v40, %s1846_s22 }
0x1852   :  { %v1720_v42 = vpop.eup %1719 }
0x1853   :  { %v1230_v44 = vadd.f32 1.0, %v1720_v42 }
0x1855   :  { %1721 = vrcp.f32 %v1230_v44  ;;  %v1242_v5 = vand.u32 2147483648, %v1230_v44  ;;  %vm1236_vm9 = vweird.f32 %v1230_v44  ;;  %v1240_v52 = vand.u32 2147483647, %v1230_v44 }
0x1857   :  { %v1243_v54 = vor.u32 1.1754944e-38, %v1242_v5  ;;  %vm1241_vm11 = vcmp.eq.f32.partialorder %v1240_v52, 8.507059e+37 }
0x185b   :  { %v1722_v49 = vpop.eup %1721 }
0x185c   :  { %v1232_v27 = vmul.f32 %v1722_v49, %v1230_v44  ;;  %vm1237_vm8 = vweird.f32 %v1722_v49 }
0x185d   :  { %vm1238_vm10 = vmor %vm1236_vm9, %vm1237_vm8 }
0x185e   :  { %v1233_v50 = vsub.f32 1.0, %v1232_v27 }
0x1860   :  { %v1234_v61 = vmul.f32 %v1722_v49, %v1233_v50 }
0x1862   :  { %v1235_v51 = vadd.f32 %v1722_v49, %v1234_v61 }
0x1864   :  { %v1239_v53 = vsel %vm1238_vm10, %v1722_v49, %v1235_v51 }
0x1865   :  { %v1244_v56 = vsel %vm1241_vm11, %v1243_v54, %v1239_v53 }
0x1866   :  { %v1247_v58 = vmul.f32 %v1244_v56, %v2235_v7 }
0x18c3   :  { %v1250_v55 = vpop.permute.xlu0 %1249 }
0x18c4   :  { %v1252_v57 = vmul.f32 %v1250_v55, %v1244_v56 }
0x18c6   :  { %1254 = vrot.lane.b32.xlu1 %v1252_v57, %s1847_s23 }
0x1938   :  { %v1255_v59 = vpop.permute.xlu1 %1254 }
0x1939   :  { %v2281_v60 = vadd.f32 %v1255_v59, %v1247_v58 }
0x193b   :  { %1723 = vtanh.f32 %v2281_v60 }
0x1941   :  { %v1724_v62 = vpop.eup %1723 }
0x1942   :  { %1260 = vrot.lane.b32.xlu2 %v1724_v62, %s1846_s22 }
0x199c   :  { %v1261_v63 = vpop.permute.xlu2 %1260 }
0x199d   :  { %v1263_v0 = vmul.f32 %v1261_v63, %v1244_v56 }
0x199f   :  { %1265 = vrot.lane.b32.xlu0 %v1263_v0, %s1847_s23 }
0x1a11   :  { %v1266_v45 = vpop.permute.xlu0 %1265 }
0x1a12   :  { %1595 = vmatmul.msk.f32.vlgmr.msra.gmra.mxu1 %vm85_vm4, %v1266_v45  ;;  %1597 = vmatmul.msk.f32.vlgmr.msra.gmra.mxu3 %vm85_vm4, %v1266_v45 }
0x1a8f   :  { %v1286_v46 = vpop.f32.mrf.mxu1 }
0x1a90   :  { %v1287_v7 = vadd.f32 %v2245_v21, %v1286_v46 }
0x1a92   :  { %v1297_v47 = vmul.f32 %v1287_v7, %v2079_v25  ;;  %v1293_v48 = vmul.f32 %v1287_v7, %v2039_v9  ;;  %v1289_v41 = vmul.f32 0.0, %v1287_v7  ;;  %v1309_v3 = vmul.f32 %v1287_v7, %v2225_v39 }
0x1a93   :  { %v1305_v11 = vmul.f32 %v1287_v7, %v2168_v6  ;;  %v1301_v21 = vmul.f32 %v1287_v7, %v2122_v8  ;;  %v1313_v14 = vmul.f32 %v1287_v7, %v2271_v33 }
0x1a94   :  { %v1298_v1 = vsel %vm176_vm5, %v1297_v47, 0.0  ;;  %v1294_v2 = vsel %vm176_vm5, %v1293_v48, 0.0  ;;  %v1290_v10 = vsel %vm176_vm5, %v1289_v41, 0.0  ;;  %v1310_v4 = vsel %vm176_vm5, %v1309_v3, 0.0 }
0x1a95   :  { %1299 = vadd.xlane.f32.xlu1 %v1298_v1  ;;  %1295 = vadd.xlane.f32.xlu2 %v1294_v2  ;;  %v1306_v12 = vsel %vm176_vm5, %v1305_v11, 0.0  ;;  %v1302_v13 = vsel %vm176_vm5, %v1301_v21, 0.0  ;;  %v1314_v15 = vsel %vm176_vm5, %v1313_v14, 0.0 }
0x1a96   :  { %1291 = vadd.xlane.f32.xlu0 %v1290_v10 }
0x1a9d   :  { %1311 = vadd.xlane.f32.xlu1 %v1310_v4  ;;  %1307 = vadd.xlane.f32.xlu2 %v1306_v12 }
0x1a9e   :  { %1303 = vadd.xlane.f32.xlu0 %v1302_v13 }
0x1aa6   :  { %1315 = vadd.xlane.f32.xlu0 %v1314_v15 }
0x1b08   :  { %v1296_v16 = vpop.xlane.xlu2 %1295  ;;  %v1300_v19 = vpop.xlane.xlu1 %1299 }
0x1b09   :  { %v1292_v17 = vpop.xlane.xlu0 %1291 }
0x1b0a   :  { %v1317_v18 = vmax.f32 %v1292_v17, %v1296_v16 }
0x1b0c   :  { %v1318_v20 = vmax.f32 %v1317_v18, %v1300_v19 }
0x1b10   :  { %v1308_v24 = vpop.xlane.xlu2 %1307  ;;  %v1312_v43 = vpop.xlane.xlu1 %1311 }
0x1b11   :  { %v1304_v22 = vpop.xlane.xlu0 %1303 }
0x1b12   :  { %v1319_v23 = vmax.f32 %v1318_v20, %v1304_v22 }
0x1b14   :  { %v1320_v26 = vmax.f32 %v1319_v23, %v1308_v24 }
0x1b16   :  { %v1321_v28 = vmax.f32 %v1320_v26, %v1312_v43 }
0x1b19   :  { %v1316_v37 = vpop.xlane.xlu0 %1315 }
0x1b1a   :  { %v1322_v29 = vmax.f32 %v1321_v28, %v1316_v37 }
0x1b1c   :  { %v1323_v30 = vsub.f32 %v1292_v17, %v1322_v29  ;;  %v1326_v31 = vsub.f32 %v1296_v16, %v1322_v29  ;;  %v1329_v34 = vsub.f32 %v1300_v19, %v1322_v29  ;;  %v1332_v35 = vsub.f32 %v1304_v22, %v1322_v29 }
0x1b1d   :  { %v1335_v42 = vsub.f32 %v1308_v24, %v1322_v29  ;;  %v1338_v49 = vsub.f32 %v1312_v43, %v1322_v29  ;;  %v1341_v50 = vsub.f32 %v1316_v37, %v1322_v29 }
0x1b1e   :  { %v1324_v36 = vmul.f32 1.442695, %v1323_v30  ;;  %v1327_v40 = vmul.f32 1.442695, %v1326_v31  ;;  %v1330_v38 = vmul.f32 1.442695, %v1329_v34  ;;  %v1424_v30 = vpop.f32.mrf.mxu3 }
0x1b1f   :  { %v1333_v44 = vmul.f32 1.442695, %v1332_v35  ;;  %v1336_v27 = vmul.f32 1.442695, %v1335_v42  ;;  %v1339_v61 = vmul.f32 1.442695, %v1338_v49 }
0x1b20   :  { %1725 = vpow2.f32 %v1324_v36  ;;  %v1342_v52 = vmul.f32 1.442695, %v1341_v50 }
0x1b21   :  { %1727 = vpow2.f32 %v1327_v40 }
0x1b22   :  { %1729 = vpow2.f32 %v1330_v38 }
0x1b23   :  { %1731 = vpow2.f32 %v1333_v44 }
0x1b24   :  { %1733 = vpow2.f32 %v1336_v27 }
0x1b25   :  { %1735 = vpow2.f32 %v1339_v61 }
0x1b26   :  { %v1726_v51 = vpop.eup %1725  ;;  %1737 = vpow2.f32 %v1342_v52 }
0x1b27   :  { %v1728_v5 = vpop.eup %1727 }
0x1b28   :  { %v1344_v53 = vadd.f32 %v1728_v5, %v1726_v51  ;;  %v1730_v54 = vpop.eup %1729 }
0x1b29   :  { %v1732_v56 = vpop.eup %1731 }
0x1b2a   :  { %v1345_v55 = vadd.f32 %v1730_v54, %v1344_v53  ;;  %v1734_v58 = vpop.eup %1733 }
0x1b2b   :  { %v1736_v62 = vpop.eup %1735 }
0x1b2c   :  { %v1346_v57 = vadd.f32 %v1732_v56, %v1345_v55  ;;  %v1738_v0 = vpop.eup %1737 }
0x1b2e   :  { %v1347_v59 = vadd.f32 %v1734_v58, %v1346_v57 }
0x1b30   :  { %v1348_v63 = vadd.f32 %v1736_v62, %v1347_v59 }
0x1b32   :  { %v1349_v45 = vadd.f32 %v1738_v0, %v1348_v63 }
0x1b34   :  { %1739 = vrcp.f32 %v1349_v45  ;;  %v1361_v48 = vand.u32 2147483648, %v1349_v45  ;;  %v1359_v1 = vand.u32 2147483647, %v1349_v45  ;;  %vm1355_vm13 = vweird.f32 %v1349_v45 }
0x1b36   :  { %v1362_v10 = vor.u32 1.1754944e-38, %v1361_v48  ;;  %vm1360_vm15 = vcmp.eq.f32.partialorder %v1359_v1, 8.507059e+37 }
0x1b3a   :  { %v1740_v46 = vpop.eup %1739 }
0x1b3b   :  { %v1351_v7 = vmul.f32 %v1740_v46, %v1349_v45  ;;  %vm1356_vm12 = vweird.f32 %v1740_v46 }
0x1b3c   :  { %vm1357_vm14 = vmor %vm1355_vm13, %vm1356_vm12 }
0x1b3d   :  { %v1352_v47 = vsub.f32 1.0, %v1351_v7  ;;  %v1614_v7 = vld [vmem:[#allocation2] ss:$0 sm:$0xff] }
0x1b3f   :  { %v1353_v41 = vmul.f32 %v1740_v46, %v1352_v47 }
0x1b41   :  { %v1354_v2 = vadd.f32 %v1740_v46, %v1353_v41 }
0x1b43   :  { %v1358_v3 = vsel %vm1357_vm14, %v1740_v46, %v1354_v2 }
0x1b44   :  { %v1363_v11 = vsel %vm1360_vm15, %v1362_v10, %v1358_v3 }
0x1b45   :  { %v1364_v21 = vmul.f32 %v1726_v51, %v1363_v11  ;;  %v1366_v4 = vmul.f32 %v1728_v5, %v1363_v11  ;;  %v1369_v12 = vmul.f32 %v1730_v54, %v1363_v11  ;;  %v1372_v15 = vmul.f32 %v1732_v56, %v1363_v11  ;;  %v1613_v54 = vld [vmem:[%s2337_s6] ss:$0 sm:$0xff] }
0x1b46   :  { %v1375_v18 = vmul.f32 %v1734_v58, %v1363_v11  ;;  %v1378_v22 = vmul.f32 %v1736_v62, %v1363_v11  ;;  %v1381_v23 = vmul.f32 %v1738_v0, %v1363_v11 }
0x1b47   :  { %v1365_v13 = vmul.f32 0.0, %v1364_v21  ;;  %v1367_v14 = vmul.f32 %v1366_v4, %v2039_v9  ;;  %v1370_v17 = vmul.f32 %v1369_v12, %v2079_v25  ;;  %v1373_v20 = vmul.f32 %v1372_v15, %v2122_v8  ;;  %v1598_v8 = vld [vmem:[%s2331_s0 + $0x1c] sm:$0xf] }
0x1b48   :  { %v1376_v26 = vmul.f32 %v1375_v18, %v2168_v6  ;;  %v1379_v28 = vmul.f32 %v1378_v22, %v2225_v39  ;;  %v1382_v37 = vmul.f32 %v1381_v23, %v2271_v33 }
0x1b49   :  { %v1368_v16 = vadd.f32 %v1367_v14, %v1365_v13 }
0x1b4b   :  { %v1371_v19 = vadd.f32 %v1370_v17, %v1368_v16 }
0x1b4d   :  { %v1374_v24 = vadd.f32 %v1373_v20, %v1371_v19 }
0x1b4f   :  { %v1377_v43 = vadd.f32 %v1376_v26, %v1374_v24 }
0x1b51   :  { %v1380_v29 = vadd.f32 %v1379_v28, %v1377_v43 }
0x1b53   :  { %v1383_v9 = vadd.f32 %v1382_v37, %v1380_v29 }
0x1b55   :  { %1596 = vmatmul.msk.f32.vlgmr.msra.gmra.mxu2 %vm85_vm4, %v1383_v9 }
0x1bd8   :  { %v1404_v25 = vpop.f32.mrf.mxu2 }
0x1bd9   :  { %v1425_v31 = vadd.f32 %v1424_v30, %v1404_v25 }
0x1bdb   :  { %v1427_v34 = vadd.f32 %v2268_v32, %v1425_v31 }
0x1bdd   :  { %1599 = vmatmul.msk.f32.vlgmr.msrb.gmra.mxu0 %vm85_vm4, %v1427_v34 }
0x1c5a   :  { %v1450_v6 = vpop.f32.mrf.mxu0 }
0x1c5b   :  { %v1453_v35 = vadd.f32 %v1598_v8, %v1450_v6 }
0x1c5d   :  { %1741 = vtanh.f32 %v1453_v35  ;;  %v1600_v33 = vmul.f32 -1.442695, %v1453_v35 }
0x1c5f   :  { %1743 = vpow2.f32 %v1600_v33 }
0x1c63   :  { %v1742_v39 = vpop.eup %1741 }
0x1c64   :  { %1476 = vrot.lane.b32.xlu2 %v1742_v39, %s1846_s22 }
0x1c65   :  { %v1744_v36 = vpop.eup %1743 }
0x1c66   :  { %v1457_v40 = vadd.f32 1.0, %v1744_v36 }
0x1c68   :  { %1745 = vrcp.f32 %v1457_v40  ;;  %v1469_v27 = vand.u32 2147483648, %v1457_v40  ;;  %vm1463_vm0 = vweird.f32 %v1457_v40  ;;  %v1467_v50 = vand.u32 2147483647, %v1457_v40 }
0x1c6a   :  { %v1470_v51 = vor.u32 1.1754944e-38, %v1469_v27  ;;  %vm1468_vm2 = vcmp.eq.f32.partialorder %v1467_v50, 8.507059e+37 }
0x1c6c   :  { %1494 = vrot.lane.b32.xlu2 %v1613_v54, %s1848_s24 }
0x1c6e   :  { %v1746_v38 = vpop.eup %1745 }
0x1c6f   :  { %v1459_v42 = vmul.f32 %v1746_v38, %v1457_v40  ;;  %vm1464_vm4 = vweird.f32 %v1746_v38 }
0x1c70   :  { %vm1465_vm1 = vmor %vm1463_vm0, %vm1464_vm4 }
0x1c71   :  { %v1460_v32 = vsub.f32 1.0, %v1459_v42 }
0x1c73   :  { %v1461_v44 = vmul.f32 %v1746_v38, %v1460_v32 }
0x1c75   :  { %v1462_v49 = vadd.f32 %v1746_v38, %v1461_v44 }
0x1c77   :  { %v1466_v61 = vsel %vm1465_vm1, %v1746_v38, %v1462_v49 }
0x1c78   :  { %v1471_v52 = vsel %vm1468_vm2, %v1470_v51, %v1466_v61 }
0x1c79   :  { %v1474_v55 = vmul.f32 %v1471_v52, %v2281_v60 }
0x1cbe   :  { %v1477_v5 = vpop.permute.xlu2 %1476 }
0x1cbf   :  { %v1479_v53 = vmul.f32 %v1477_v5, %v1471_v52 }
0x1cc1   :  { %1481 = vrot.lane.b32.xlu1 %v1479_v53, %s1847_s23 }
0x1cc6   :  { %v1495_v62 = vpop.permute.xlu2 %1494 }
0x1d33   :  { %v1482_v56 = vpop.permute.xlu1 %1481 }
0x1d34   :  { %v1484_v57 = vadd.f32 %v1482_v56, %v1474_v55 }
0x1d36   :  { %1747 = vtanh.f32 %v1484_v57 }
0x1d3c   :  { %v1748_v58 = vpop.eup %1747 }
0x1d3d   :  { %1487 = vrot.lane.b32.xlu0 %v1748_v58, %s1846_s22  ;;  %s1849_s22 = smov [#allocation8]  }
0x1d3e   :  { %s1543_s27 = sshll.u32 %s1849_s22, 4  ;;  %s1544_s27 = int_to_ptr.vmem [resolvable:$true] %s1543_s27 }
0x1daf   :  { %v1488_v59 = vpop.permute.xlu0 %1487 }
0x1db0   :  { %v1490_v63 = vmul.f32 %v1488_v59, %v1471_v52 }
0x1db2   :  { %v1497_v0 = vmul.f32 %v1495_v62, %v1490_v63  ;;  %1532 = vrot.lane.b32.xlu2 %v1490_v63, %s1847_s23 }
0x1db4   :  { %1499 = vrot.lane.b32.xlu0 %v1497_v0, %s1847_s23 }
0x1e0c   :  { %v1533_v45 = vpop.permute.xlu2 %1532 }
0x1e0d   :  { %1535 = vst.msk [vmem:[#allocation8] sm:$0xf] %vm176_vm5, %v1533_v45 }
0x1e0e   :  { %1548 = dma.vmem_to_hbm [thread:$0]  %s1544_s27, 64, %s1546_s26, [#allocation5]  }
0x1e26   :  { %v1500_v46 = vpop.permute.xlu0 %1499 }
0x1e27   :  { %v1502_v60 = vsel %vm176_vm5, %v1500_v46, 0.0 }
0x1e28   :  { %1503 = vadd.xlane.f32.xlu1 %v1502_v60 }
0x1e9b   :  { %v1504_v47 = vpop.xlane.xlu1 %1503 }
0x1e9c   :  { %v1509_v48 = vadd.f32 %v1614_v7, %v1504_v47 }
0x1e9e   :  { %v1601_v41 = vmul.f32 -1.442695, %v1509_v48 }
0x1ea0   :  { %1749 = vpow2.f32 %v1601_v41 }
0x1ea6   :  { %v1750_v1 = vpop.eup %1749 }
0x1ea7   :  { %v1513_v2 = vadd.f32 1.0, %v1750_v1 }
0x1ea9   :  { %1751 = vrcp.f32 %v1513_v2  ;;  %v1525_v21 = vand.u32 2147483648, %v1513_v2  ;;  %v1523_v12 = vand.u32 2147483647, %v1513_v2  ;;  %vm1519_vm3 = vweird.f32 %v1513_v2 }
0x1eab   :  { %v1526_v14 = vor.u32 1.1754944e-38, %v1525_v21  ;;  %vm1524_vm8 = vcmp.eq.f32.partialorder %v1523_v12, 8.507059e+37 }
0x1eaf   :  { %v1752_v10 = vpop.eup %1751 }
0x1eb0   :  { %v1515_v3 = vmul.f32 %v1752_v10, %v1513_v2  ;;  %vm1520_vm5 = vweird.f32 %v1752_v10 }
0x1eb1   :  { %vm1521_vm7 = vmor %vm1519_vm3, %vm1520_vm5 }
0x1eb2   :  { %v1516_v11 = vsub.f32 1.0, %v1515_v3 }
0x1eb4   :  { %v1517_v4 = vmul.f32 %v1752_v10, %v1516_v11 }
0x1eb6   :  { %v1518_v13 = vadd.f32 %v1752_v10, %v1517_v4 }
0x1eb8   :  { %v1522_v15 = vsel %vm1521_vm7, %v1752_v10, %v1518_v13 }
0x1eb9   :  { %v1527_v16 = vsel %vm1524_vm8, %v1526_v14, %v1522_v15 }
0x1eba   :  { %1530 = vst.msk [vmem:[%s2339_s8] sm:$0xf] %vm1529_vm6, %v1527_v16 }
0x1ebb   :  { %1839 = dma.done.wait [#allocation5], 64  }
0x1ebc   :  { %1840 = vsyncadd [#allocation5], 4294967232 }
0x1ebd   :  { %1555 = vsyncpa [#allocation4], 1 }
0x1ebe   :  { %1556 = vsyncpa [#allocation7], 1 }
0x1ebf   :  { %1557 = vsyncpa [#allocation5], 1 }

</bundles_post_ra>
